<compile_context>
chip_gen: v7x
topology: tpu7x:2x2x1
jax: 0.10.0
libtpu: 0.0.40
codegen_flags: <defaults>
</compile_context>

<pallas_src>
import functools

import jax
import jax.numpy as jnp
from jax import lax
from jax.experimental import pallas as pl
from jax.experimental.pallas import tpu as pltpu


def _round_up(x, m):
    return (x + m - 1) // m * m


def _vmem_limit_bytes():
    # v5e/v6e: 128 MiB physical VMEM (16/32 MiB scoped default); v7x: 64 MiB.
    # Ask for ~3/4 of physical, capped at 100 MiB; conservative fallback.
    try:
        cap = pltpu.get_tpu_info().vmem_capacity_bytes
        return int(min(100 * 1024 * 1024, cap * 3 // 4))
    except Exception:
        return 48 * 1024 * 1024


# --------------------------------------------------------------------------
# 1) prep kernel:  XW = X @ W_enc   (bf16 MXU, f32 accumulate, F-reduction grid)
# --------------------------------------------------------------------------
def _xw_kernel(x_ref, w_ref, o_ref, acc_ref):
    kk = pl.program_id(1)

    @pl.when(kk == 0)
    def _init():
        acc_ref[...] = jnp.zeros_like(acc_ref)

    acc_ref[...] += jnp.dot(x_ref[...], w_ref[...],
                            preferred_element_type=jnp.float32)

    @pl.when(kk == pl.num_programs(1) - 1)
    def _finalize():
        o_ref[...] = acc_ref[...].astype(o_ref.dtype)


def xw_matmul(x, w):
    n, f = x.shape
    h = w.shape[1]
    tm = min(512, _round_up(n, 8))
    n_rows = _round_up(n, tm)
    tf = f if f <= 2048 else 512                    # reduction tile over features
    f_pad = _round_up(f, tf)
    x_p = jnp.pad(x, ((0, n_rows - n), (0, f_pad - f))).astype(jnp.bfloat16)
    w_p = jnp.pad(w, ((0, f_pad - f), (0, 0))).astype(jnp.bfloat16)
    out = pl.pallas_call(
        _xw_kernel,
        out_shape=jax.ShapeDtypeStruct((n_rows, h), jnp.bfloat16),
        grid=(n_rows // tm, f_pad // tf),
        in_specs=[pl.BlockSpec((tm, tf), lambda i, kk: (i, kk)),
                  pl.BlockSpec((tf, h), lambda i, kk: (kk, 0))],
        out_specs=pl.BlockSpec((tm, h), lambda i, kk: (i, 0)),
        scratch_shapes=[pltpu.VMEM((tm, h), jnp.float32)],
        compiler_params=pltpu.CompilerParams(
            dimension_semantics=("parallel", "arbitrary"),
            vmem_limit_bytes=_vmem_limit_bytes()),
    )(x_p, w_p)
    return out[:n]


# --------------------------------------------------------------------------
# 2) fused pos/neg GCN encoder:  Z_cat = PReLU(A_hat @ [XW | XW_perm])
#    A_hat (the only O(N^2) operand) is streamed once, cast to bf16 in-kernel;
#    xw_cat is VMEM-resident; f32 accumulator; fused [tm, 2H] output.
# --------------------------------------------------------------------------
def _encoder_kernel(a_ref, xw_ref, o_ref, acc_ref, *, alpha, tk, xw_resident):
    kk = pl.program_id(1)

    @pl.when(kk == 0)
    def _init():
        acc_ref[...] = jnp.zeros_like(acc_ref)

    a = a_ref[...].astype(jnp.bfloat16)       # in-kernel cast: no wrapper rewrite
    if xw_resident:
        start = pl.multiple_of(kk * tk, tk)
        xw = xw_ref[pl.ds(start, tk), :]      # slice the resident operand
    else:
        xw = xw_ref[...]
    acc_ref[...] += jnp.dot(a, xw.astype(jnp.bfloat16),
                            preferred_element_type=jnp.float32)

    @pl.when(kk == pl.num_programs(1) - 1)
    def _finalize():
        acc = acc_ref[...]
        o_ref[...] = jnp.where(acc > 0, acc,
                               jnp.float32(alpha) * acc).astype(o_ref.dtype)  # PReLU


def fused_encoder(a_hat, xw_cat, alpha):
    n = a_hat.shape[0]
    h2 = xw_cat.shape[1]
    if n <= 1024:
        tm = tk = _round_up(n, 8)
        n_pad = tm
    else:
        tm, tk = 512, 1024
        n_pad = _round_up(n, 1024)
    if n_pad != n:
        # TODO(synk): for production-size graphs pre-pad (and pre-cast) A_hat
        # once offline instead of paying this O(N^2) pad inside the step.
        a_hat = jnp.pad(a_hat, ((0, n_pad - n), (0, n_pad - n)))
    xw_p = jnp.pad(xw_cat, ((0, n_pad - n), (0, 0)))

    # Keep xw_cat VMEM-resident (streamed from HBM exactly once) when it fits.
    xw_bytes = n_pad * h2 * xw_p.dtype.itemsize
    xw_resident = xw_bytes <= 16 * 1024 * 1024
    if xw_resident:
        xw_spec = pl.BlockSpec((n_pad, h2), lambda i, kk: (0, 0))
    else:
        xw_spec = pl.BlockSpec((tk, h2), lambda i, kk: (kk, 0))

    z_cat = pl.pallas_call(
        functools.partial(_encoder_kernel, alpha=alpha, tk=tk,
                          xw_resident=xw_resident),
        out_shape=jax.ShapeDtypeStruct((n_pad, h2), jnp.float32),
        grid=(n_pad // tm, n_pad // tk),
        in_specs=[pl.BlockSpec((tm, tk), lambda i, kk: (i, kk)), xw_spec],
        out_specs=pl.BlockSpec((tm, h2), lambda i, kk: (i, 0)),
        scratch_shapes=[pltpu.VMEM((tm, h2), jnp.float32)],
        compiler_params=pltpu.CompilerParams(
            dimension_semantics=("parallel", "arbitrary"),
            vmem_limit_bytes=_vmem_limit_bytes()),
    )(a_hat, xw_p)
    return z_cat                                               # [n_pad, 2H] f32


# --------------------------------------------------------------------------
# 3) summary readout + ClusterNet soft k-means, tiled over N in two phases.
# --------------------------------------------------------------------------
def _cluster_stats_kernel(z_ref, mu0_ref, sum_ref, stats_ref, cnt_ref,
                          *, n, h, k, kp, tn, cluster_temp):
    i = pl.program_id(0)

    @pl.when(i == 0)
    def _init():
        sum_ref[...] = jnp.zeros_like(sum_ref)
        stats_ref[...] = jnp.zeros_like(stats_ref)
        cnt_ref[...] = jnp.zeros_like(cnt_ref)

    z = z_ref[...][:, :h].astype(jnp.float32)                    # pos half [tn, H]
    row = lax.broadcasted_iota(jnp.int32, (tn, 1), 0) + i * tn
    row_valid = row < n                                          # mask padded rows

    # DGI readout accumulation: summary = sigmoid(mean over nodes of pos_z).
    sum_ref[...] += jnp.sum(jnp.where(row_valid, z, 0.0), axis=0, keepdims=True)

    # ClusterNet: data = row-normalized pos_z (eps-guarded).
    ssq = jnp.sum(z * z, axis=-1, keepdims=True)
    data = z * lax.rsqrt(ssq + jnp.float32(1e-12))

    lane = lax.broadcasted_iota(jnp.int32, (1, kp), 1)
    col_valid = lane < k                                         # mask padded clusters

    dist = lax.dot_general(data, mu0_ref[...], (((1,), (1,)), ((), ())),
                           preferred_element_type=jnp.float32)   # [tn, kp]
    logits = jnp.where(col_valid, jnp.float32(cluster_temp) * dist,
                       jnp.float32(-1e30))
    m = jnp.max(logits, axis=-1, keepdims=True)
    e = jnp.exp(logits - m)
    r = e / jnp.sum(e, axis=-1, keepdims=True)
    r = jnp.where(row_valid, r, 0.0)

    stats_ref[...] += lax.dot_general(r, data, (((0,), (0,)), ((), ())),
                                      preferred_element_type=jnp.float32)  # [kp, H]
    cnt_ref[...] += jnp.sum(r, axis=0, keepdims=True)                      # [1, kp]

    @pl.when(i == pl.num_programs(0) - 1)
    def _finalize():
        sum_ref[...] = jax.nn.sigmoid(sum_ref[...] * jnp.float32(1.0 / n))


def _cluster_assign_kernel(z_ref, mu_ref, r_ref, dist_ref,
                           *, h, k, kp, cluster_temp):
    z = z_ref[...][:, :h].astype(jnp.float32)
    ssq = jnp.sum(z * z, axis=-1, keepdims=True)
    data = z * lax.rsqrt(ssq + jnp.float32(1e-12))

    dist = lax.dot_general(data, mu_ref[...], (((1,), (1,)), ((), ())),
                           preferred_element_type=jnp.float32)   # [tn, kp]
    lane = lax.broadcasted_iota(jnp.int32, (1, kp), 1)
    logits = jnp.where(lane < k, jnp.float32(cluster_temp) * dist,
                       jnp.float32(-1e30))
    m = jnp.max(logits, axis=-1, keepdims=True)
    e = jnp.exp(logits - m)
    r = e / jnp.sum(e, axis=-1, keepdims=True)

    # Only the K real cluster lanes go to HBM (no 128-lane write amplification).
    r_ref[...] = r[:, :k]
    dist_ref[...] = dist[:, :k]


def cluster_and_summary(z_cat_p, init_idx, n, k, cluster_temp):
    n_pad, h2 = z_cat_p.shape
    h = h2 // 2
    kp = _round_up(max(k, 1), 128)             # lane-padded clusters for MXU/softmax
    tn = n_pad if n_pad <= 1024 else 1024
    assert n_pad % tn == 0
    vmem = _vmem_limit_bytes()

    # mu_init = pos_z[cluster_init_idx]: tiny bounds-safe K x H gather in XLA.
    mu0 = jnp.take(z_cat_p[:, :h], init_idx.astype(jnp.int32), axis=0)
    mu0_p = jnp.zeros((kp, h), jnp.float32).at[:k, :].set(mu0.astype(jnp.float32))

    # Phase 1: summary sum + soft-k-means statistics (single k-means iteration).
    summary, stats, cnt = pl.pallas_call(
        functools.partial(_cluster_stats_kernel, n=n, h=h, k=k, kp=kp, tn=tn,
                          cluster_temp=float(cluster_temp)),
        out_shape=(jax.ShapeDtypeStruct((1, h), jnp.float32),
                   jax.ShapeDtypeStruct((kp, h), jnp.float32),
                   jax.ShapeDtypeStruct((1, kp), jnp.float32)),
        grid=(n_pad // tn,),
        in_specs=[pl.BlockSpec((tn, h2), lambda i: (i, 0)),
                  pl.BlockSpec((kp, h), lambda i: (0, 0))],
        out_specs=(pl.BlockSpec((1, h), lambda i: (0, 0)),
                   pl.BlockSpec((kp, h), lambda i: (0, 0)),
                   pl.BlockSpec((1, kp), lambda i: (0, 0))),
        compiler_params=pltpu.CompilerParams(
            dimension_semantics=("arbitrary",), vmem_limit_bytes=vmem),
    )(z_cat_p, mu0_p)

    # Exact cluster-mean normalization (tiny [K, H] XLA op).
    mu_p = stats / (jnp.transpose(cnt) + jnp.float32(1e-15))     # [kp, H]

    # Phase 2: final assignments vs updated mu; "parallel" rows use both
    # TensorCores on v7x.
    r_p, dist_p = pl.pallas_call(
        functools.partial(_cluster_assign_kernel, h=h, k=k, kp=kp,
                          cluster_temp=float(cluster_temp)),
        out_shape=(jax.ShapeDtypeStruct((n_pad, k), jnp.float32),
                   jax.ShapeDtypeStruct((n_pad, k), jnp.float32)),
        grid=(n_pad // tn,),
        in_specs=[pl.BlockSpec((tn, h2), lambda i: (i, 0)),
                  pl.BlockSpec((kp, h), lambda i: (0, 0))],
        out_specs=(pl.BlockSpec((tn, k), lambda i: (i, 0)),
                   pl.BlockSpec((tn, k), lambda i: (i, 0))),
        compiler_params=pltpu.CompilerParams(
            dimension_semantics=("parallel",), vmem_limit_bytes=vmem),
    )(z_cat_p, mu_p)

    return summary.reshape(h), mu_p[:k], r_p[:n], dist_p[:n]


# --------------------------------------------------------------------------
# DeepGraphInfomax.forward
# --------------------------------------------------------------------------
def dgi_forward(x, a_hat, w_enc, cluster_init_idx, perm, *,
                K, cluster_temp, prelu_alpha=0.25):
    # TODO(synk): PReLU alpha is a learnable Parameter in the torch module;
    # pass it as a scalar input if gradient/training parity is needed.
    n = x.shape[0]
    h = w_enc.shape[1]
    # 1) XW = X @ W_enc (small matmul, shared by the positive/corrupted passes).
    xw = xw_matmul(x, w_enc)                                         # [N, H] bf16
    # 2) corruption on the tiny intermediate: (X[perm]) @ W == (X @ W)[perm].
    xw_cat = jnp.concatenate([xw, jnp.take(xw, perm, axis=0)], axis=1)   # [N, 2H]
    # 3) fused pos/neg encoder: A_hat streamed from HBM once for both passes.
    z_cat_p = fused_encoder(a_hat, xw_cat, prelu_alpha)              # [N_pad, 2H]
    # 4) summary readout + ClusterNet soft k-means (two-phase, tiled over N).
    summary, mu, r, dist = cluster_and_summary(z_cat_p, cluster_init_idx, n, K,
                                               cluster_temp)
    pos_z = z_cat_p[:n, :h]
    neg_z = z_cat_p[:n, h:]
    return pos_z, neg_z, summary, mu, r, dist


if __name__ == "__main__":
    N, F, H, K = 64, 32, 32, 8          # nodes, feat dim, hidden_channels, args.K
    cluster_temp = 5.0                  # args.clustertemp

    key = jax.random.PRNGKey(0)
    kx, kw, kwd, kperm = jax.random.split(key, 4)

    # node features
    x = jax.random.normal(kx, (N, F), jnp.float32)

    # ring graph + self loops, symmetric normalization -> dense A_hat
    idx = jnp.arange(N)
    A = jnp.zeros((N, N), jnp.float32)
    A = A.at[idx, (idx + 1) % N].set(1.0)
    A = A.at[(idx + 1) % N, idx].set(1.0)
    A = A + jnp.eye(N, dtype=jnp.float32)
    dinv = 1.0 / jnp.sqrt(A.sum(axis=1))
    a_hat = A * dinv[:, None] * dinv[None, :]
    # One-time cast OUTSIDE the jitted step: the encoder then streams A_hat in
    # bf16 with no per-call O(N^2) cast/pad rewrite (passing f32 also works).
    a_hat = a_hat.astype(jnp.bfloat16)

    # deterministic parameter init (shapes from module __init__)
    bound_enc = 1.0 / jnp.sqrt(jnp.float32(F))
    w_enc = jax.random.uniform(kw, (F, H), jnp.float32, -bound_enc, bound_enc)
    bound_w = 1.0 / jnp.sqrt(jnp.float32(H))
    # DGI discriminator weight: used by discriminate()/loss(), not forward().
    weight = jax.random.uniform(kwd, (H, H), jnp.float32, -bound_w, bound_w)  # noqa: F841

    perm = jax.random.permutation(kperm, N)             # corruption permutation
    cluster_init_idx = jnp.arange(K, dtype=jnp.int32)   # args[2]: seed nodes

    fwd = jax.jit(functools.partial(dgi_forward, K=K,
                                    cluster_temp=cluster_temp,
                                    prelu_alpha=0.25))
    outs = jax.block_until_ready(fwd(x, a_hat, w_enc, cluster_init_idx, perm))
    pos_z, neg_z, summary, mu, r, dist = outs

    assert pos_z.shape == (N, H) and neg_z.shape == (N, H)
    assert summary.shape == (H,)
    assert mu.shape == (K, H)
    assert r.shape == (N, K) and dist.shape == (N, K)
    assert bool(jnp.all(jnp.isfinite(pos_z))) and bool(jnp.all(jnp.isfinite(neg_z)))
    assert bool(jnp.all(jnp.isfinite(summary))) and bool(jnp.all(jnp.isfinite(mu)))
    assert bool(jnp.all(jnp.isfinite(r))) and bool(jnp.all(jnp.isfinite(dist)))
    # responsibilities sum to 1 over the K real clusters
    assert bool(jnp.all(jnp.abs(jnp.sum(r, axis=1) - 1.0) < 1e-3))
    print("KERNEL_OK")
</pallas_src>

<mosaic_0001>
module attributes {stable_mosaic.version = 11 : i64} {
  func.func @_xw_kernel(%arg0: i32, %arg1: i32, %arg2: memref<64x32xbf16, #tpu.memory_space<vmem>>, %arg3: memref<32x32xbf16, #tpu.memory_space<vmem>>, %arg4: memref<64x32xbf16, #tpu.memory_space<vmem>>, %arg5: memref<64x32xf32, #tpu.memory_space<vmem>>) attributes {dimension_semantics = [#tpu.dimension_semantics<parallel>, #tpu.dimension_semantics<arbitrary>], iteration_bounds = array<i64: 1, 1>, scalar_prefetch = 0 : i64, scratch_operands = 1 : i64, tpu.core_type = #tpu.core_type<tc>, window_params = [{transform_indices = @transform_0, window_bounds = array<i64: 64, 32>}, {transform_indices = @transform_1, window_bounds = array<i64: 32, 32>}, {transform_indices = @transform_2, window_bounds = array<i64: 64, 32>}]} {
    %c0_i32 = arith.constant 0 : i32
    %0 = arith.cmpi eq, %arg1, %c0_i32 : i32
    %1 = arith.extui %0 : i1 to i32
    %c0_i32_0 = arith.constant 0 : i32
    %2 = arith.cmpi ne, %1, %c0_i32_0 : i32
    scf.if %2 {
      %cst_10 = arith.constant 0.000000e+00 : f32
      %12 = vector.broadcast %cst_10 : f32 to vector<64x32xf32>
      %c0_11 = arith.constant 0 : index
      %c0_12 = arith.constant 0 : index
      %13 = vector.load %arg5[%c0_11, %c0_12] : memref<64x32xf32, #tpu.memory_space<vmem>>, vector<64x32xf32>
      tpu.vector_store %arg5[%c0_11, %c0_12], %12 {strides = array<i32>} : memref<64x32xf32, #tpu.memory_space<vmem>>, vector<64x32xf32>,
    } else {
    }
    %c0 = arith.constant 0 : index
    %c0_1 = arith.constant 0 : index
    %3 = vector.load %arg5[%c0, %c0_1] : memref<64x32xf32, #tpu.memory_space<vmem>>, vector<64x32xf32>
    %c0_2 = arith.constant 0 : index
    %c0_3 = arith.constant 0 : index
    %4 = vector.load %arg2[%c0_2, %c0_3] : memref<64x32xbf16, #tpu.memory_space<vmem>>, vector<64x32xbf16>
    %c0_4 = arith.constant 0 : index
    %c0_5 = arith.constant 0 : index
    %5 = vector.load %arg3[%c0_4, %c0_5] : memref<32x32xbf16, #tpu.memory_space<vmem>>, vector<32x32xbf16>
    %cst = arith.constant dense<0.000000e+00> : vector<64x32xf32>
    %6 = tpu.matmul %4, %5, %cst {dimension_numbers = #tpu.dot_dimension_numbers<[1], [0], [0], [1], [0, 0, 1, 1], [], []>} : vector<64x32xbf16>, vector<32x32xbf16>, vector<64x32xf32> -> vector<64x32xf32>
    %7 = arith.addf %3, %6 : vector<64x32xf32>
    %c0_6 = arith.constant 0 : index
    %c0_7 = arith.constant 0 : index
    %8 = vector.load %arg5[%c0_6, %c0_7] : memref<64x32xf32, #tpu.memory_space<vmem>>, vector<64x32xf32>
    tpu.vector_store %arg5[%c0_6, %c0_7], %7 {strides = array<i32>} : memref<64x32xf32, #tpu.memory_space<vmem>>, vector<64x32xf32>,
    %c0_i32_8 = arith.constant 0 : i32
    %9 = arith.cmpi eq, %arg1, %c0_i32_8 : i32
    %10 = arith.extui %9 : i1 to i32
    %c0_i32_9 = arith.constant 0 : i32
    %11 = arith.cmpi ne, %10, %c0_i32_9 : i32
    scf.if %11 {
      %c0_10 = arith.constant 0 : index
      %c0_11 = arith.constant 0 : index
      %12 = vector.load %arg5[%c0_10, %c0_11] : memref<64x32xf32, #tpu.memory_space<vmem>>, vector<64x32xf32>
      %13 = arith.truncf %12 : vector<64x32xf32> to vector<64x32xbf16>
      %c0_12 = arith.constant 0 : index
      %c0_13 = arith.constant 0 : index
      %14 = vector.load %arg4[%c0_12, %c0_13] : memref<64x32xbf16, #tpu.memory_space<vmem>>, vector<64x32xbf16>
      tpu.vector_store %arg4[%c0_12, %c0_13], %13 {strides = array<i32>} : memref<64x32xbf16, #tpu.memory_space<vmem>>, vector<64x32xbf16>,
    } else {
    }
    return
  }
  func.func @transform_0(%arg0: i32, %arg1: i32) -> (i32, i32) {
    %c0_i32 = arith.constant 0 : i32
    return %arg0, %arg1 : i32, i32
  }
  func.func @transform_1(%arg0: i32, %arg1: i32) -> (i32, i32) {
    %c0_i32 = arith.constant 0 : i32
    %c0_i32_0 = arith.constant 0 : i32
    return %arg1, %c0_i32 : i32, i32
  }
  func.func @transform_2(%arg0: i32, %arg1: i32) -> (i32, i32) {
    %c0_i32 = arith.constant 0 : i32
    %c0_i32_0 = arith.constant 0 : i32
    return %arg0, %c0_i32 : i32, i32
  }
}

module attributes {stable_mosaic.version = 11 : i64} {
  func.func @_encoder_kernel(%arg0: i32, %arg1: i32, %arg2: memref<64x64xbf16, #tpu.memory_space<vmem>>, %arg3: memref<64x64xbf16, #tpu.memory_space<vmem>>, %arg4: memref<64x64xf32, #tpu.memory_space<vmem>>, %arg5: memref<64x64xf32, #tpu.memory_space<vmem>>) attributes {dimension_semantics = [#tpu.dimension_semantics<parallel>, #tpu.dimension_semantics<arbitrary>], iteration_bounds = array<i64: 1, 1>, scalar_prefetch = 0 : i64, scratch_operands = 1 : i64, tpu.core_type = #tpu.core_type<tc>, window_params = [{transform_indices = @transform_0, window_bounds = array<i64: 64, 64>}, {pipeline_mode = #tpu.pipeline_mode<synchronous>, transform_indices = @transform_1, window_bounds = array<i64: 64, 64>}, {transform_indices = @transform_2, window_bounds = array<i64: 64, 64>}]} {
    %c0_i32 = arith.constant 0 : i32
    %0 = arith.cmpi eq, %arg1, %c0_i32 : i32
    %1 = arith.extui %0 : i1 to i32
    %c0_i32_0 = arith.constant 0 : i32
    %2 = arith.cmpi ne, %1, %c0_i32_0 : i32
    scf.if %2 {
      %cst_9 = arith.constant 0.000000e+00 : f32
      %15 = vector.broadcast %cst_9 : f32 to vector<64x64xf32>
      %c0_10 = arith.constant 0 : index
      %c0_11 = arith.constant 0 : index
      %16 = vector.load %arg5[%c0_10, %c0_11] : memref<64x64xf32, #tpu.memory_space<vmem>>, vector<64x64xf32>
      tpu.vector_store %arg5[%c0_10, %c0_11], %15 {strides = array<i32>} : memref<64x64xf32, #tpu.memory_space<vmem>>, vector<64x64xf32>,
    } else {
    }
    %c0 = arith.constant 0 : index
    %c0_1 = arith.constant 0 : index
    %3 = vector.load %arg2[%c0, %c0_1] : memref<64x64xbf16, #tpu.memory_space<vmem>>, vector<64x64xbf16>
    %c64_i32 = arith.constant 64 : i32
    %4 = arith.muli %arg1, %c64_i32 : i32
    %5 = tpu.assume_multiple %4, 64 : i32
    %6 = arith.index_cast %5 : i32 to index
    %c0_2 = arith.constant 0 : index
    %7 = vector.load %arg3[%6, %c0_2] : memref<64x64xbf16, #tpu.memory_space<vmem>>, vector<64x64xbf16>
    %c0_3 = arith.constant 0 : index
    %c0_4 = arith.constant 0 : index
    %8 = vector.load %arg5[%c0_3, %c0_4] : memref<64x64xf32, #tpu.memory_space<vmem>>, vector<64x64xf32>
    %cst = arith.constant dense<0.000000e+00> : vector<64x64xf32>
    %9 = tpu.matmul %3, %7, %cst {dimension_numbers = #tpu.dot_dimension_numbers<[1], [0], [0], [1], [0, 0, 1, 1], [], []>} : vector<64x64xbf16>, vector<64x64xbf16>, vector<64x64xf32> -> vector<64x64xf32>
    %10 = arith.addf %8, %9 : vector<64x64xf32>
    %c0_5 = arith.constant 0 : index
    %c0_6 = arith.constant 0 : index
    %11 = vector.load %arg5[%c0_5, %c0_6] : memref<64x64xf32, #tpu.memory_space<vmem>>, vector<64x64xf32>
    tpu.vector_store %arg5[%c0_5, %c0_6], %10 {strides = array<i32>} : memref<64x64xf32, #tpu.memory_space<vmem>>, vector<64x64xf32>,
    %c0_i32_7 = arith.constant 0 : i32
    %12 = arith.cmpi eq, %arg1, %c0_i32_7 : i32
    %13 = arith.extui %12 : i1 to i32
    %c0_i32_8 = arith.constant 0 : i32
    %14 = arith.cmpi ne, %13, %c0_i32_8 : i32
    scf.if %14 {
      %c0_9 = arith.constant 0 : index
      %c0_10 = arith.constant 0 : index
      %15 = vector.load %arg5[%c0_9, %c0_10] : memref<64x64xf32, #tpu.memory_space<vmem>>, vector<64x64xf32>
      %cst_11 = arith.constant 0.000000e+00 : f32
      %16 = vector.broadcast %cst_11 : f32 to vector<64x64xf32>
      %17 = arith.cmpf ogt, %15, %16 : vector<64x64xf32>
      %cst_12 = arith.constant 2.500000e-01 : f32
      %18 = vector.broadcast %cst_12 : f32 to vector<64x64xf32>
      %19 = arith.mulf %18, %15 : vector<64x64xf32>
      %20 = arith.select %17, %15, %19 : vector<64x64xi1>, vector<64x64xf32>
      %c0_13 = arith.constant 0 : index
      %c0_14 = arith.constant 0 : index
      %21 = vector.load %arg4[%c0_13, %c0_14] : memref<64x64xf32, #tpu.memory_space<vmem>>, vector<64x64xf32>
      tpu.vector_store %arg4[%c0_13, %c0_14], %20 {strides = array<i32>} : memref<64x64xf32, #tpu.memory_space<vmem>>, vector<64x64xf32>,
    } else {
    }
    return
  }
  func.func @transform_0(%arg0: i32, %arg1: i32) -> (i32, i32) {
    %c0_i32 = arith.constant 0 : i32
    return %arg0, %arg1 : i32, i32
  }
  func.func @transform_1(%arg0: i32, %arg1: i32) -> (i32, i32) {
    %c0_i32 = arith.constant 0 : i32
    %c0_i32_0 = arith.constant 0 : i32
    %c0_i32_1 = arith.constant 0 : i32
    return %c0_i32, %c0_i32_0 : i32, i32
  }
  func.func @transform_2(%arg0: i32, %arg1: i32) -> (i32, i32) {
    %c0_i32 = arith.constant 0 : i32
    %c0_i32_0 = arith.constant 0 : i32
    return %arg0, %c0_i32 : i32, i32
  }
}

module attributes {stable_mosaic.version = 11 : i64} {
  func.func @_cluster_stats_kernel(%arg0: i32, %arg1: memref<64x64xf32, #tpu.memory_space<vmem>>, %arg2: memref<128x32xf32, #tpu.memory_space<vmem>>, %arg3: memref<1x32xf32, #tpu.memory_space<vmem>>, %arg4: memref<128x32xf32, #tpu.memory_space<vmem>>, %arg5: memref<1x128xf32, #tpu.memory_space<vmem>>) attributes {dimension_semantics = [#tpu.dimension_semantics<arbitrary>], iteration_bounds = array<i64: 1>, scalar_prefetch = 0 : i64, scratch_operands = 0 : i64, tpu.core_type = #tpu.core_type<tc>, window_params = [{transform_indices = @transform_0, window_bounds = array<i64: 64, 64>}, {pipeline_mode = #tpu.pipeline_mode<synchronous>, transform_indices = @transform_1, window_bounds = array<i64: 128, 32>}, {pipeline_mode = #tpu.pipeline_mode<synchronous>, transform_indices = @transform_2, window_bounds = array<i64: 1, 32>}, {pipeline_mode = #tpu.pipeline_mode<synchronous>, transform_indices = @transform_3, window_bounds = array<i64: 128, 32>}, {pipeline_mode = #tpu.pipeline_mode<synchronous>, transform_indices = @transform_4, window_bounds = array<i64: 1, 128>}]} {
    %c0_i32 = arith.constant 0 : i32
    %0 = arith.cmpi eq, %arg0, %c0_i32 : i32
    %1 = arith.extui %0 : i1 to i32
    %c0_i32_0 = arith.constant 0 : i32
    %2 = arith.cmpi ne, %1, %c0_i32_0 : i32
    scf.if %2 {
      %cst_30 = arith.constant 0.000000e+00 : f32
      %64 = vector.broadcast %cst_30 : f32 to vector<1x32xf32>
      %c0_31 = arith.constant 0 : index
      %c0_32 = arith.constant 0 : index
      %65 = vector.load %arg3[%c0_31, %c0_32] : memref<1x32xf32, #tpu.memory_space<vmem>>, vector<1x32xf32>
      tpu.vector_store %arg3[%c0_31, %c0_32], %64 {strides = array<i32>} : memref<1x32xf32, #tpu.memory_space<vmem>>, vector<1x32xf32>,
      %cst_33 = arith.constant 0.000000e+00 : f32
      %66 = vector.broadcast %cst_33 : f32 to vector<128x32xf32>
      %c0_34 = arith.constant 0 : index
      %c0_35 = arith.constant 0 : index
      %67 = vector.load %arg4[%c0_34, %c0_35] : memref<128x32xf32, #tpu.memory_space<vmem>>, vector<128x32xf32>
      tpu.vector_store %arg4[%c0_34, %c0_35], %66 {strides = array<i32>} : memref<128x32xf32, #tpu.memory_space<vmem>>, vector<128x32xf32>,
      %cst_36 = arith.constant 0.000000e+00 : f32
      %68 = vector.broadcast %cst_36 : f32 to vector<1x128xf32>
      %c0_37 = arith.constant 0 : index
      %c0_38 = arith.constant 0 : index
      %69 = vector.load %arg5[%c0_37, %c0_38] : memref<1x128xf32, #tpu.memory_space<vmem>>, vector<1x128xf32>
      tpu.vector_store %arg5[%c0_37, %c0_38], %68 {strides = array<i32>} : memref<1x128xf32, #tpu.memory_space<vmem>>, vector<1x128xf32>,
    } else {
    }
    %c0 = arith.constant 0 : index
    %c0_1 = arith.constant 0 : index
    %3 = vector.load %arg1[%c0, %c0_1] : memref<64x64xf32, #tpu.memory_space<vmem>>, vector<64x64xf32>
    %4 = vector.extract_strided_slice %3 {offsets = [0, 0], sizes = [64, 32], strides = [1, 1]} : vector<64x64xf32> to vector<64x32xf32>
    %5 = tpu.iota {dimensions = array<i32: 0>} : vector<64x1xi32>
    %c64_i32 = arith.constant 64 : i32
    %6 = arith.muli %arg0, %c64_i32 : i32
    %7 = vector.broadcast %6 : i32 to vector<64x1xi32>
    %8 = arith.addi %5, %7 : vector<64x1xi32>
    %c64_i32_2 = arith.constant 64 : i32
    %9 = vector.broadcast %c64_i32_2 : i32 to vector<64x1xi32>
    %10 = arith.cmpi slt, %8, %9 : vector<64x1xi32>
    %c0_3 = arith.constant 0 : index
    %c0_4 = arith.constant 0 : index
    %11 = vector.load %arg3[%c0_3, %c0_4] : memref<1x32xf32, #tpu.memory_space<vmem>>, vector<1x32xf32>
    %cst = arith.constant 0.000000e+00 : f32
    %12 = vector.shape_cast %10 : vector<64x1xi1> to vector<64x1xi1>
    %13 = vector.broadcast %12 : vector<64x1xi1> to vector<64x32xi1>
    %14 = vector.broadcast %cst : f32 to vector<64x32xf32>
    %15 = arith.select %13, %4, %14 : vector<64x32xi1>, vector<64x32xf32>
    %cst_5 = arith.constant dense<0.000000e+00> : vector<32xf32>
    %16 = vector.multi_reduction <add>, %15, %cst_5 [0] : vector<64x32xf32> to vector<32xf32>
    %17 = vector.shape_cast %16 : vector<32xf32> to vector<1x32xf32>
    %18 = arith.addf %11, %17 : vector<1x32xf32>
    %c0_6 = arith.constant 0 : index
    %c0_7 = arith.constant 0 : index
    %19 = vector.load %arg3[%c0_6, %c0_7] : memref<1x32xf32, #tpu.memory_space<vmem>>, vector<1x32xf32>
    tpu.vector_store %arg3[%c0_6, %c0_7], %18 {strides = array<i32>} : memref<1x32xf32, #tpu.memory_space<vmem>>, vector<1x32xf32>,
    %20 = arith.mulf %4, %4 : vector<64x32xf32>
    %cst_8 = arith.constant dense<0.000000e+00> : vector<64xf32>
    %21 = vector.multi_reduction <add>, %20, %cst_8 [1] : vector<64x32xf32> to vector<64xf32>
    %22 = vector.shape_cast %21 : vector<64xf32> to vector<64x1xf32>
    %cst_9 = arith.constant 9.99999996E-13 : f32
    %23 = vector.broadcast %cst_9 : f32 to vector<64x1xf32>
    %24 = arith.addf %22, %23 : vector<64x1xf32>
    %25 = math.rsqrt %24 : vector<64x1xf32>
    %26 = vector.broadcast %25 : vector<64x1xf32> to vector<64x32xf32>
    %27 = arith.mulf %4, %26 : vector<64x32xf32>
    %28 = tpu.iota {dimensions = array<i32: 1>} : vector<1x128xi32>
    %c8_i32 = arith.constant 8 : i32
    %29 = vector.broadcast %c8_i32 : i32 to vector<1x128xi32>
    %30 = arith.cmpi slt, %28, %29 : vector<1x128xi32>
    %c0_10 = arith.constant 0 : index
    %c0_11 = arith.constant 0 : index
    %31 = vector.load %arg2[%c0_10, %c0_11] : memref<128x32xf32, #tpu.memory_space<vmem>>, vector<128x32xf32>
    %cst_12 = arith.constant dense<0.000000e+00> : vector<64x128xf32>
    %32 = tpu.matmul %27, %31, %cst_12 {dimension_numbers = #tpu.dot_dimension_numbers<[1], [1], [0], [0], [0, 0, 1, 0], [], []>} : vector<64x32xf32>, vector<128x32xf32>, vector<64x128xf32> -> vector<64x128xf32>
    %cst_13 = arith.constant 5.000000e+00 : f32
    %33 = vector.broadcast %cst_13 : f32 to vector<64x128xf32>
    %34 = arith.mulf %33, %32 : vector<64x128xf32>
    %cst_14 = arith.constant -1.000000e+30 : f32
    %35 = vector.shape_cast %30 : vector<1x128xi1> to vector<1x128xi1>
    %36 = vector.broadcast %35 : vector<1x128xi1> to vector<64x128xi1>
    %37 = vector.broadcast %cst_14 : f32 to vector<64x128xf32>
    %38 = arith.select %36, %34, %37 : vector<64x128xi1>, vector<64x128xf32>
    %cst_15 = arith.constant dense<0xFF800000> : vector<64xf32>
    %39 = vector.multi_reduction <maximumf>, %38, %cst_15 [1] : vector<64x128xf32> to vector<64xf32>
    %40 = vector.shape_cast %39 : vector<64xf32> to vector<64x1xf32>
    %41 = vector.broadcast %40 : vector<64x1xf32> to vector<64x128xf32>
    %42 = arith.subf %38, %41 : vector<64x128xf32>
    %43 = math.exp %42 : vector<64x128xf32>
    %cst_16 = arith.constant dense<0.000000e+00> : vector<64xf32>
    %44 = vector.multi_reduction <add>, %43, %cst_16 [1] : vector<64x128xf32> to vector<64xf32>
    %45 = vector.shape_cast %44 : vector<64xf32> to vector<64x1xf32>
    %46 = vector.broadcast %45 : vector<64x1xf32> to vector<64x128xf32>
    %47 = arith.divf %43, %46 : vector<64x128xf32>
    %cst_17 = arith.constant 0.000000e+00 : f32
    %48 = vector.shape_cast %10 : vector<64x1xi1> to vector<64x1xi1>
    %49 = vector.broadcast %48 : vector<64x1xi1> to vector<64x128xi1>
    %50 = vector.broadcast %cst_17 : f32 to vector<64x128xf32>
    %51 = arith.select %49, %47, %50 : vector<64x128xi1>, vector<64x128xf32>
    %c0_18 = arith.constant 0 : index
    %c0_19 = arith.constant 0 : index
    %52 = vector.load %arg4[%c0_18, %c0_19] : memref<128x32xf32, #tpu.memory_space<vmem>>, vector<128x32xf32>
    %cst_20 = arith.constant dense<0.000000e+00> : vector<128x32xf32>
    %53 = tpu.matmul %51, %27, %cst_20 {dimension_numbers = #tpu.dot_dimension_numbers<[0], [0], [1], [1], [0, 1, 1, 1], [], []>} : vector<64x128xf32>, vector<64x32xf32>, vector<128x32xf32> -> vector<128x32xf32>
    %54 = arith.addf %52, %53 : vector<128x32xf32>
    %c0_21 = arith.constant 0 : index
    %c0_22 = arith.constant 0 : index
    %55 = vector.load %arg4[%c0_21, %c0_22] : memref<128x32xf32, #tpu.memory_space<vmem>>, vector<128x32xf32>
    tpu.vector_store %arg4[%c0_21, %c0_22], %54 {strides = array<i32>} : memref<128x32xf32, #tpu.memory_space<vmem>>, vector<128x32xf32>,
    %c0_23 = arith.constant 0 : index
    %c0_24 = arith.constant 0 : index
    %56 = vector.load %arg5[%c0_23, %c0_24] : memref<1x128xf32, #tpu.memory_space<vmem>>, vector<1x128xf32>
    %cst_25 = arith.constant dense<0.000000e+00> : vector<128xf32>
    %57 = vector.multi_reduction <add>, %51, %cst_25 [0] : vector<64x128xf32> to vector<128xf32>
    %58 = vector.shape_cast %57 : vector<128xf32> to vector<1x128xf32>
    %59 = arith.addf %56, %58 : vector<1x128xf32>
    %c0_26 = arith.constant 0 : index
    %c0_27 = arith.constant 0 : index
    %60 = vector.load %arg5[%c0_26, %c0_27] : memref<1x128xf32, #tpu.memory_space<vmem>>, vector<1x128xf32>
    tpu.vector_store %arg5[%c0_26, %c0_27], %59 {strides = array<i32>} : memref<1x128xf32, #tpu.memory_space<vmem>>, vector<1x128xf32>,
    %c0_i32_28 = arith.constant 0 : i32
    %61 = arith.cmpi eq, %arg0, %c0_i32_28 : i32
    %62 = arith.extui %61 : i1 to i32
    %c0_i32_29 = arith.constant 0 : i32
    %63 = arith.cmpi ne, %62, %c0_i32_29 : i32
    scf.if %63 {
      %c0_30 = arith.constant 0 : index
      %c0_31 = arith.constant 0 : index
      %64 = vector.load %arg3[%c0_30, %c0_31] : memref<1x32xf32, #tpu.memory_space<vmem>>, vector<1x32xf32>
      %cst_32 = arith.constant 1.562500e-02 : f32
      %65 = vector.broadcast %cst_32 : f32 to vector<1x32xf32>
      %66 = arith.mulf %64, %65 : vector<1x32xf32>
      %67 = arith.negf %66 : vector<1x32xf32>
      %68 = math.exp %67 : vector<1x32xf32>
      %cst_33 = arith.constant 1.000000e+00 : f32
      %69 = vector.broadcast %cst_33 : f32 to vector<1x32xf32>
      %70 = arith.addf %69, %68 : vector<1x32xf32>
      %71 = arith.divf %69, %70 : vector<1x32xf32>
      %c0_34 = arith.constant 0 : index
      %c0_35 = arith.constant 0 : index
      %72 = vector.load %arg3[%c0_34, %c0_35] : memref<1x32xf32, #tpu.memory_space<vmem>>, vector<1x32xf32>
      tpu.vector_store %arg3[%c0_34, %c0_35], %71 {strides = array<i32>} : memref<1x32xf32, #tpu.memory_space<vmem>>, vector<1x32xf32>,
    } else {
    }
    return
  }
  func.func @transform_0(%arg0: i32) -> (i32, i32) {
    %c0_i32 = arith.constant 0 : i32
    %c0_i32_0 = arith.constant 0 : i32
    return %arg0, %c0_i32 : i32, i32
  }
  func.func @transform_1(%arg0: i32) -> (i32, i32) {
    %c0_i32 = arith.constant 0 : i32
    %c0_i32_0 = arith.constant 0 : i32
    %c0_i32_1 = arith.constant 0 : i32
    return %c0_i32, %c0_i32_0 : i32, i32
  }
  func.func @transform_2(%arg0: i32) -> (i32, i32) {
    %c0_i32 = arith.constant 0 : i32
    %c0_i32_0 = arith.constant 0 : i32
    %c0_i32_1 = arith.constant 0 : i32
    return %c0_i32, %c0_i32_0 : i32, i32
  }
  func.func @transform_3(%arg0: i32) -> (i32, i32) {
    %c0_i32 = arith.constant 0 : i32
    %c0_i32_0 = arith.constant 0 : i32
    %c0_i32_1 = arith.constant 0 : i32
    return %c0_i32, %c0_i32_0 : i32, i32
  }
  func.func @transform_4(%arg0: i32) -> (i32, i32) {
    %c0_i32 = arith.constant 0 : i32
    %c0_i32_0 = arith.constant 0 : i32
    %c0_i32_1 = arith.constant 0 : i32
    return %c0_i32, %c0_i32_0 : i32, i32
  }
}

module attributes {stable_mosaic.version = 11 : i64} {
  func.func @_cluster_assign_kernel(%arg0: i32, %arg1: memref<64x64xf32, #tpu.memory_space<vmem>>, %arg2: memref<128x32xf32, #tpu.memory_space<vmem>>, %arg3: memref<64x8xf32, #tpu.memory_space<vmem>>, %arg4: memref<64x8xf32, #tpu.memory_space<vmem>>) attributes {dimension_semantics = [#tpu.dimension_semantics<parallel>], iteration_bounds = array<i64: 1>, scalar_prefetch = 0 : i64, scratch_operands = 0 : i64, tpu.core_type = #tpu.core_type<tc>, window_params = [{transform_indices = @transform_0, window_bounds = array<i64: 64, 64>}, {pipeline_mode = #tpu.pipeline_mode<synchronous>, transform_indices = @transform_1, window_bounds = array<i64: 128, 32>}, {transform_indices = @transform_2, window_bounds = array<i64: 64, 8>}, {transform_indices = @transform_3, window_bounds = array<i64: 64, 8>}]} {
    %c0 = arith.constant 0 : index
    %c0_0 = arith.constant 0 : index
    %0 = vector.load %arg1[%c0, %c0_0] : memref<64x64xf32, #tpu.memory_space<vmem>>, vector<64x64xf32>
    %1 = vector.extract_strided_slice %0 {offsets = [0, 0], sizes = [64, 32], strides = [1, 1]} : vector<64x64xf32> to vector<64x32xf32>
    %2 = arith.mulf %1, %1 : vector<64x32xf32>
    %cst = arith.constant dense<0.000000e+00> : vector<64xf32>
    %3 = vector.multi_reduction <add>, %2, %cst [1] : vector<64x32xf32> to vector<64xf32>
    %4 = vector.shape_cast %3 : vector<64xf32> to vector<64x1xf32>
    %cst_1 = arith.constant 9.99999996E-13 : f32
    %5 = vector.broadcast %cst_1 : f32 to vector<64x1xf32>
    %6 = arith.addf %4, %5 : vector<64x1xf32>
    %7 = math.rsqrt %6 : vector<64x1xf32>
    %8 = vector.broadcast %7 : vector<64x1xf32> to vector<64x32xf32>
    %9 = arith.mulf %1, %8 : vector<64x32xf32>
    %c0_2 = arith.constant 0 : index
    %c0_3 = arith.constant 0 : index
    %10 = vector.load %arg2[%c0_2, %c0_3] : memref<128x32xf32, #tpu.memory_space<vmem>>, vector<128x32xf32>
    %cst_4 = arith.constant dense<0.000000e+00> : vector<64x128xf32>
    %11 = tpu.matmul %9, %10, %cst_4 {dimension_numbers = #tpu.dot_dimension_numbers<[1], [1], [0], [0], [0, 0, 1, 0], [], []>} : vector<64x32xf32>, vector<128x32xf32>, vector<64x128xf32> -> vector<64x128xf32>
    %12 = tpu.iota {dimensions = array<i32: 1>} : vector<1x128xi32>
    %c8_i32 = arith.constant 8 : i32
    %13 = vector.broadcast %c8_i32 : i32 to vector<1x128xi32>
    %14 = arith.cmpi slt, %12, %13 : vector<1x128xi32>
    %cst_5 = arith.constant 5.000000e+00 : f32
    %15 = vector.broadcast %cst_5 : f32 to vector<64x128xf32>
    %16 = arith.mulf %15, %11 : vector<64x128xf32>
    %cst_6 = arith.constant -1.000000e+30 : f32
    %17 = vector.shape_cast %14 : vector<1x128xi1> to vector<1x128xi1>
    %18 = vector.broadcast %17 : vector<1x128xi1> to vector<64x128xi1>
    %19 = vector.broadcast %cst_6 : f32 to vector<64x128xf32>
    %20 = arith.select %18, %16, %19 : vector<64x128xi1>, vector<64x128xf32>
    %cst_7 = arith.constant dense<0xFF800000> : vector<64xf32>
    %21 = vector.multi_reduction <maximumf>, %20, %cst_7 [1] : vector<64x128xf32> to vector<64xf32>
    %22 = vector.shape_cast %21 : vector<64xf32> to vector<64x1xf32>
    %23 = vector.broadcast %22 : vector<64x1xf32> to vector<64x128xf32>
    %24 = arith.subf %20, %23 : vector<64x128xf32>
    %25 = math.exp %24 : vector<64x128xf32>
    %cst_8 = arith.constant dense<0.000000e+00> : vector<64xf32>
    %26 = vector.multi_reduction <add>, %25, %cst_8 [1] : vector<64x128xf32> to vector<64xf32>
    %27 = vector.shape_cast %26 : vector<64xf32> to vector<64x1xf32>
    %28 = vector.broadcast %27 : vector<64x1xf32> to vector<64x128xf32>
    %29 = arith.divf %25, %28 : vector<64x128xf32>
    %30 = vector.extract_strided_slice %29 {offsets = [0, 0], sizes = [64, 8], strides = [1, 1]} : vector<64x128xf32> to vector<64x8xf32>
    %c0_9 = arith.constant 0 : index
    %c0_10 = arith.constant 0 : index
    %31 = vector.load %arg3[%c0_9, %c0_10] : memref<64x8xf32, #tpu.memory_space<vmem>>, vector<64x8xf32>
    tpu.vector_store %arg3[%c0_9, %c0_10], %30 {strides = array<i32>} : memref<64x8xf32, #tpu.memory_space<vmem>>, vector<64x8xf32>,
    %32 = vector.extract_strided_slice %11 {offsets = [0, 0], sizes = [64, 8], strides = [1, 1]} : vector<64x128xf32> to vector<64x8xf32>
    %c0_11 = arith.constant 0 : index
    %c0_12 = arith.constant 0 : index
    %33 = vector.load %arg4[%c0_11, %c0_12] : memref<64x8xf32, #tpu.memory_space<vmem>>, vector<64x8xf32>
    tpu.vector_store %arg4[%c0_11, %c0_12], %32 {strides = array<i32>} : memref<64x8xf32, #tpu.memory_space<vmem>>, vector<64x8xf32>,
    return
  }
  func.func @transform_0(%arg0: i32) -> (i32, i32) {
    %c0_i32 = arith.constant 0 : i32
    %c0_i32_0 = arith.constant 0 : i32
    return %arg0, %c0_i32 : i32, i32
  }
  func.func @transform_1(%arg0: i32) -> (i32, i32) {
    %c0_i32 = arith.constant 0 : i32
    %c0_i32_0 = arith.constant 0 : i32
    %c0_i32_1 = arith.constant 0 : i32
    return %c0_i32, %c0_i32_0 : i32, i32
  }
  func.func @transform_2(%arg0: i32) -> (i32, i32) {
    %c0_i32 = arith.constant 0 : i32
    %c0_i32_0 = arith.constant 0 : i32
    return %arg0, %c0_i32 : i32, i32
  }
  func.func @transform_3(%arg0: i32) -> (i32, i32) {
    %c0_i32 = arith.constant 0 : i32
    %c0_i32_0 = arith.constant 0 : i32
    return %arg0, %c0_i32 : i32, i32
  }
}

</mosaic_0001>

<bundles_post_ra>
// kernel: dgi_forward.4
= control target key start
LH: loop header
LB: loop body
LE: loop exit
PB: predicated region body
PF: predicated region fallthrough
CT: control target
= control target key end

     0   :  { %vm16_vm0 = vcmask 261120   ;;  %v282_v1 = vmov 0.0   ;;  %vm214_vm1 = vcmask 257024   ;;  %s368_s1 = inlined_call_operand.vmem [shape: bf16[32,32], index: 1, kind: input, shape index: {}]   ;;  %s369_s0 = inlined_call_operand.vmem [shape: bf16[64,32], index: 0, kind: input, shape index: {}]   ;;  %s370_s2 = inlined_call_operand.vmem [shape: bf16[64,32], index: 2, kind: output, shape index: {}]  }
   0x1   :  { %v276_v0 = vld [vmem:[%s368_s1] sm:$0xff]   ;;  %19 = vst.msk [vmem:[#allocation2 + $0x10] sm:$0xff] %vm16_vm0, %v282_v1  ;;  %17 = vst.msk [vmem:[#allocation2] sm:$0xff] %vm16_vm0, %v282_v1  ;;  %v277_v2 = vld [vmem:[%s368_s1 + $0x8] sm:$0xff]  }
   0x2   :  { %18 = vst.msk [vmem:[#allocation2 + $0x8] sm:$0xff] %vm16_vm0, %v282_v1  ;;  %20 = vst.msk [vmem:[#allocation2 + $0x18] sm:$0xff] %vm16_vm0, %v282_v1  ;;  %259 = vmatprep.subr.bf16.mxu0 %v276_v0  ;;  %271 = vmatprep.subr.bf16.mxu1 %v276_v0  ;;  %v278_v3 = vld [vmem:[%s369_s0] sm:$0xff]   ;;  %v279_v4 = vld [vmem:[%s369_s0 + $0x10] sm:$0xff]  }
   0x3   :  { %21 = vst.msk [vmem:[#allocation2 + $0x20] sm:$0xff] %vm16_vm0, %v282_v1  ;;  %22 = vst.msk [vmem:[#allocation2 + $0x28] sm:$0xff] %vm16_vm0, %v282_v1  ;;  %260 = vmatpush3.bf16.msra.mxu0 %v276_v0  ;;  %273 = vmatpush3.bf16.msra.mxu1 %v276_v0  ;;  %v280_v5 = vld [vmem:[%s369_s0 + $0x8] sm:$0xff]   ;;  %v281_v6 = vld [vmem:[%s369_s0 + $0x18] sm:$0xff]  }
   0x4   :  { %23 = vst.msk [vmem:[#allocation2 + $0x30] sm:$0xff] %vm16_vm0, %v282_v1  ;;  %24 = vst.msk [vmem:[#allocation2 + $0x38] sm:$0xff] %vm16_vm0, %v282_v1  ;;  %261 = vmatprep.subr.bf16.mxu0 %v277_v2  ;;  %272 = vmatprep.subr.bf16.mxu1 %v277_v2 }
   0x5   :  { %263 = vmatprep.mubr.msk.bf16.mxu0 %vm16_vm0, %v278_v3  ;;  %267 = vmatprep.mubr.msk.bf16.mxu1 %vm16_vm0, %v279_v4 }
   0x7   :  { %262 = vmatpush3.bf16.msra.mxu0 %v277_v2  ;;  %274 = vmatpush3.bf16.msra.mxu1 %v277_v2 }
   0x8   :  { %v27_v7 = vld [vmem:[#allocation2 + $0x10] sm:$0xff]  ;;  %v25_v9 = vld [vmem:[#allocation2] sm:$0xff] }
   0x9   :  { %v28_v13 = vld [vmem:[#allocation2 + $0x18] sm:$0xff]  ;;  %v26_v19 = vld [vmem:[#allocation2 + $0x8] sm:$0xff] }
   0xa   :  { %264 = vmatmul.mubr.msk.bf16.vlgmr.msra.gmra.mrb[0].mxu0 %vm16_vm0, %v280_v5  ;;  %268 = vmatmul.mubr.msk.bf16.vlgmr.msra.gmra.mrb[0].mxu1 %vm16_vm0, %v281_v6  ;;  %v29_v10 = vld [vmem:[#allocation2 + $0x20] sm:$0xff]  ;;  %v30_v20 = vld [vmem:[#allocation2 + $0x28] sm:$0xff] }
   0xb   :  { %v31_v8 = vld [vmem:[#allocation2 + $0x30] sm:$0xff]  ;;  %v32_v14 = vld [vmem:[#allocation2 + $0x38] sm:$0xff] }
  0xdd   :  { %v265_v11 = vpop.f32.mrb[0].mxu0  ;;  %v269_v12 = vpop.f32.mrb[0].mxu1 }
  0xde   :  { %v157_v15 = vadd.f32 %v265_v11, %v27_v7  ;;  %v161_v16 = vadd.f32 %v269_v12, %v31_v8  ;;  %v124_v17 = vpop.f32.mrb[1].mxu0  ;;  %v140_v18 = vpop.f32.mrb[1].mxu1 }
  0xdf   :  { %v155_v21 = vadd.f32 %v124_v17, %v25_v9  ;;  %v159_v22 = vadd.f32 %v140_v18, %v29_v10  ;;  %v266_v23 = vpop.f32.mrb[2].mxu0  ;;  %v270_v24 = vpop.f32.mrb[2].mxu1 }
  0xe0   :  { %165 = vst.msk [vmem:[#allocation2 + $0x10] sm:$0xff] %vm16_vm0, %v157_v15  ;;  %169 = vst.msk [vmem:[#allocation2 + $0x30] sm:$0xff] %vm16_vm0, %v161_v16  ;;  %v158_v25 = vadd.f32 %v266_v23, %v28_v13  ;;  %v162_v26 = vadd.f32 %v270_v24, %v32_v14  ;;  %v127_v27 = vpop.f32.mrb[3].mxu0  ;;  %v143_v28 = vpop.f32.mrb[3].mxu1 }
  0xe1   :  { %163 = vst.msk [vmem:[#allocation2] sm:$0xff] %vm16_vm0, %v155_v21  ;;  %167 = vst.msk [vmem:[#allocation2 + $0x20] sm:$0xff] %vm16_vm0, %v159_v22  ;;  %v156_v29 = vadd.f32 %v127_v27, %v26_v19  ;;  %v160_v30 = vadd.f32 %v143_v28, %v30_v20 }
  0xe2   :  { %166 = vst.msk [vmem:[#allocation2 + $0x18] sm:$0xff] %vm16_vm0, %v158_v25  ;;  %170 = vst.msk [vmem:[#allocation2 + $0x38] sm:$0xff] %vm16_vm0, %v162_v26 }
  0xe3   :  { %164 = vst.msk [vmem:[#allocation2 + $0x8] sm:$0xff] %vm16_vm0, %v156_v29  ;;  %168 = vst.msk [vmem:[#allocation2 + $0x28] sm:$0xff] %vm16_vm0, %v160_v30 }
  0xe7   :  { %v176_v31 = vld [vmem:[#allocation2 + $0x10] sm:$0xff] }
  0xe8   :  { %v180_v32 = vld [vmem:[#allocation2 + $0x30] sm:$0xff]  ;;  %v247_v33 = vpack.c.bf16 %v176_v31, %v176_v31  ;;  %v174_v35 = vld [vmem:[#allocation2] sm:$0xff] }
  0xe9   :  { %v251_v34 = vpack.c.bf16 %v180_v32, %v180_v32  ;;  %v178_v36 = vld [vmem:[#allocation2 + $0x20] sm:$0xff]  ;;  %v245_v37 = vpack.c.bf16 %v174_v35, %v174_v35  ;;  %v177_v39 = vld [vmem:[#allocation2 + $0x18] sm:$0xff] }
  0xea   :  { %v249_v38 = vpack.c.bf16 %v178_v36, %v178_v36  ;;  %v181_v40 = vld [vmem:[#allocation2 + $0x38] sm:$0xff]  ;;  %217 = vst.msk [vmem:[%s370_s2 + $0x8] sm:$0xf] %vm214_vm1, %v247_v33  ;;  %v248_v41 = vpack.c.bf16 %v177_v39, %v177_v39  ;;  %v175_v43 = vld [vmem:[#allocation2 + $0x8] sm:$0xff] }
  0xeb   :  { %221 = vst.msk [vmem:[%s370_s2 + $0x18] sm:$0xf] %vm214_vm1, %v251_v34  ;;  %v252_v42 = vpack.c.bf16 %v181_v40, %v181_v40  ;;  %v179_v44 = vld [vmem:[#allocation2 + $0x28] sm:$0xff]  ;;  %215 = vst.msk [vmem:[%s370_s2] sm:$0xf] %vm214_vm1, %v245_v37  ;;  %v246_v45 = vpack.c.bf16 %v175_v43, %v175_v43 }
  0xec   :  { %219 = vst.msk [vmem:[%s370_s2 + $0x10] sm:$0xf] %vm214_vm1, %v249_v38  ;;  %v250_v46 = vpack.c.bf16 %v179_v44, %v179_v44  ;;  %218 = vst.msk [vmem:[%s370_s2 + $0xc] sm:$0xf] %vm214_vm1, %v248_v41 }
  0xed   :  { %222 = vst.msk [vmem:[%s370_s2 + $0x1c] sm:$0xf] %vm214_vm1, %v252_v42  ;;  %216 = vst.msk [vmem:[%s370_s2 + $0x4] sm:$0xf] %vm214_vm1, %v246_v45 }
  0xee   :  { %220 = vst.msk [vmem:[%s370_s2 + $0x14] sm:$0xf] %vm214_vm1, %v250_v46 }

// kernel: dgi_forward.5
= control target key start
LH: loop header
LB: loop body
LE: loop exit
PB: predicated region body
PF: predicated region fallthrough
CT: control target
= control target key end

     0   :  { %vm16_vm0 = vcmask 523264   ;;  %v294_v1 = vmov 0.0   ;;  %s386_s1 = inlined_call_operand.vmem [shape: bf16[64,64], index: 1, kind: input, shape index: {}]   ;;  %s387_s0 = inlined_call_operand.vmem [shape: bf16[64,64], index: 0, kind: input, shape index: {}]   ;;  %s388_s2 = inlined_call_operand.vmem [shape: f32[64,64], index: 2, kind: output, shape index: {}]  }
   0x1   :  { %v286_v0 = vld [vmem:[%s386_s1] sm:$0xff]   ;;  %19 = vst.msk [vmem:[#allocation2 + $0x10] sm:$0xff] %vm16_vm0, %v294_v1  ;;  %17 = vst.msk [vmem:[#allocation2] sm:$0xff] %vm16_vm0, %v294_v1  ;;  %v287_v2 = vld [vmem:[%s386_s1 + $0x8] sm:$0xff]  }
   0x2   :  { %18 = vst.msk [vmem:[#allocation2 + $0x8] sm:$0xff] %vm16_vm0, %v294_v1  ;;  %20 = vst.msk [vmem:[#allocation2 + $0x18] sm:$0xff] %vm16_vm0, %v294_v1  ;;  %261 = vmatprep.subr.bf16.mxu0 %v286_v0  ;;  %277 = vmatprep.subr.bf16.mxu1 %v286_v0  ;;  %v288_v3 = vld [vmem:[%s386_s1 + $0x10] sm:$0xff]   ;;  %v290_v4 = vld [vmem:[%s387_s0] sm:$0xff]  }
   0x3   :  { %21 = vst.msk [vmem:[#allocation2 + $0x20] sm:$0xff] %vm16_vm0, %v294_v1  ;;  %22 = vst.msk [vmem:[#allocation2 + $0x28] sm:$0xff] %vm16_vm0, %v294_v1  ;;  %262 = vmatpush3.bf16.msra.mxu0 %v286_v0  ;;  %281 = vmatpush3.bf16.msra.mxu1 %v286_v0  ;;  %v291_v5 = vld [vmem:[%s387_s0 + $0x10] sm:$0xff]   ;;  %v289_v6 = vld [vmem:[%s386_s1 + $0x18] sm:$0xff]  }
   0x4   :  { %23 = vst.msk [vmem:[#allocation2 + $0x30] sm:$0xff] %vm16_vm0, %v294_v1  ;;  %24 = vst.msk [vmem:[#allocation2 + $0x38] sm:$0xff] %vm16_vm0, %v294_v1  ;;  %263 = vmatprep.subr.bf16.mxu0 %v287_v2  ;;  %278 = vmatprep.subr.bf16.mxu1 %v287_v2  ;;  %v292_v7 = vld [vmem:[%s387_s0 + $0x8] sm:$0xff]   ;;  %v293_v8 = vld [vmem:[%s387_s0 + $0x18] sm:$0xff]  }
   0x5   :  { %269 = vmatprep.mubr.msk.bf16.mxu0 %vm16_vm0, %v290_v4  ;;  %273 = vmatprep.mubr.msk.bf16.mxu1 %vm16_vm0, %v291_v5 }
   0x7   :  { %264 = vmatpush3.bf16.msra.mxu0 %v287_v2  ;;  %282 = vmatpush3.bf16.msra.mxu1 %v287_v2 }
   0x8   :  { %265 = vmatprep.subr.bf16.mxu0 %v288_v3  ;;  %279 = vmatprep.subr.bf16.mxu1 %v288_v3  ;;  %v48_v9 = vld [vmem:[#allocation2 + $0x10] sm:$0xff]  ;;  %v46_v11 = vld [vmem:[#allocation2] sm:$0xff] }
   0x9   :  { %v49_v15 = vld [vmem:[#allocation2 + $0x18] sm:$0xff]  ;;  %v47_v21 = vld [vmem:[#allocation2 + $0x8] sm:$0xff] }
   0xa   :  { %v50_v12 = vld [vmem:[#allocation2 + $0x20] sm:$0xff]  ;;  %v51_v22 = vld [vmem:[#allocation2 + $0x28] sm:$0xff] }
   0xb   :  { %266 = vmatpush3.bf16.msra.mxu0 %v288_v3  ;;  %283 = vmatpush3.bf16.msra.mxu1 %v288_v3  ;;  %v52_v10 = vld [vmem:[#allocation2 + $0x30] sm:$0xff]  ;;  %v53_v16 = vld [vmem:[#allocation2 + $0x38] sm:$0xff] }
   0xc   :  { %267 = vmatprep.subr.bf16.mxu0 %v289_v6  ;;  %280 = vmatprep.subr.bf16.mxu1 %v289_v6 }
   0xf   :  { %268 = vmatpush3.bf16.msra.mxu0 %v289_v6  ;;  %284 = vmatpush3.bf16.msra.mxu1 %v289_v6 }
  0x12   :  { %270 = vmatmul.mubr.msk.bf16.vlgmr.msra.gmra.mrb[0].mxu0 %vm16_vm0, %v292_v7  ;;  %274 = vmatmul.mubr.msk.bf16.vlgmr.msra.gmra.mrb[0].mxu1 %vm16_vm0, %v293_v8 }
  0xe5   :  { %v271_v13 = vpop.f32.mrb[0].mxu0  ;;  %v275_v14 = vpop.f32.mrb[0].mxu1 }
  0xe6   :  { %v178_v17 = vadd.f32 %v271_v13, %v48_v9  ;;  %v182_v18 = vadd.f32 %v275_v14, %v52_v10  ;;  %v145_v19 = vpop.f32.mrb[1].mxu0  ;;  %v161_v20 = vpop.f32.mrb[1].mxu1 }
  0xe7   :  { %v176_v23 = vadd.f32 %v145_v19, %v46_v11  ;;  %v180_v24 = vadd.f32 %v161_v20, %v50_v12  ;;  %v272_v25 = vpop.f32.mrb[2].mxu0  ;;  %v276_v26 = vpop.f32.mrb[2].mxu1 }
  0xe8   :  { %186 = vst.msk [vmem:[#allocation2 + $0x10] sm:$0xff] %vm16_vm0, %v178_v17  ;;  %190 = vst.msk [vmem:[#allocation2 + $0x30] sm:$0xff] %vm16_vm0, %v182_v18  ;;  %v179_v27 = vadd.f32 %v272_v25, %v49_v15  ;;  %v183_v28 = vadd.f32 %v276_v26, %v53_v16  ;;  %v148_v29 = vpop.f32.mrb[3].mxu0  ;;  %v164_v30 = vpop.f32.mrb[3].mxu1 }
  0xe9   :  { %184 = vst.msk [vmem:[#allocation2] sm:$0xff] %vm16_vm0, %v176_v23  ;;  %188 = vst.msk [vmem:[#allocation2 + $0x20] sm:$0xff] %vm16_vm0, %v180_v24  ;;  %v177_v31 = vadd.f32 %v148_v29, %v47_v21  ;;  %v181_v32 = vadd.f32 %v164_v30, %v51_v22 }
  0xea   :  { %187 = vst.msk [vmem:[#allocation2 + $0x18] sm:$0xff] %vm16_vm0, %v179_v27  ;;  %191 = vst.msk [vmem:[#allocation2 + $0x38] sm:$0xff] %vm16_vm0, %v183_v28 }
  0xeb   :  { %185 = vst.msk [vmem:[#allocation2 + $0x8] sm:$0xff] %vm16_vm0, %v177_v31  ;;  %189 = vst.msk [vmem:[#allocation2 + $0x28] sm:$0xff] %vm16_vm0, %v181_v32 }
  0xef   :  { %v197_v33 = vld [vmem:[#allocation2 + $0x10] sm:$0xff] }
  0xf0   :  { %v201_v34 = vld [vmem:[#allocation2 + $0x30] sm:$0xff]  ;;  %vm205_vm1 = vcmp.gt.f32.partialorder %v197_v33, 0.0  ;;  %v213_v35 = vmul.f32 0.25, %v197_v33  ;;  %v195_v37 = vld [vmem:[#allocation2] sm:$0xff] }
  0xf1   :  { %vm209_vm2 = vcmp.gt.f32.partialorder %v201_v34, 0.0  ;;  %v217_v36 = vmul.f32 0.25, %v201_v34  ;;  %v199_v38 = vld [vmem:[#allocation2 + $0x20] sm:$0xff]  ;;  %vm203_vm3 = vcmp.gt.f32.partialorder %v195_v37, 0.0  ;;  %v211_v39 = vmul.f32 0.25, %v195_v37  ;;  %v198_v41 = vld [vmem:[#allocation2 + $0x18] sm:$0xff] }
  0xf2   :  { %vm207_vm4 = vcmp.gt.f32.partialorder %v199_v38, 0.0  ;;  %v215_v40 = vmul.f32 0.25, %v199_v38  ;;  %v202_v42 = vld [vmem:[#allocation2 + $0x38] sm:$0xff]  ;;  %v221_v43 = vsel %vm205_vm1, %v197_v33, %v213_v35  ;;  %vm206_vm5 = vcmp.gt.f32.partialorder %v198_v41, 0.0  ;;  %v196_v46 = vld [vmem:[#allocation2 + $0x8] sm:$0xff] }
  0xf3   :  { %v225_v44 = vsel %vm209_vm2, %v201_v34, %v217_v36  ;;  %v214_v45 = vmul.f32 0.25, %v198_v41  ;;  %v200_v47 = vld [vmem:[#allocation2 + $0x28] sm:$0xff]  ;;  %229 = vst.msk [vmem:[%s388_s2 + $0x10] sm:$0xff] %vm16_vm0, %v221_v43  ;;  %v219_v48 = vsel %vm203_vm3, %v195_v37, %v211_v39  ;;  %vm210_vm6 = vcmp.gt.f32.partialorder %v202_v42, 0.0 }
  0xf4   :  { %233 = vst.msk [vmem:[%s388_s2 + $0x30] sm:$0xff] %vm16_vm0, %v225_v44  ;;  %v223_v49 = vsel %vm207_vm4, %v199_v38, %v215_v40  ;;  %v218_v50 = vmul.f32 0.25, %v202_v42  ;;  %227 = vst.msk [vmem:[%s388_s2] sm:$0xff] %vm16_vm0, %v219_v48  ;;  %vm204_vm7 = vcmp.gt.f32.partialorder %v196_v46, 0.0  ;;  %v212_v52 = vmul.f32 0.25, %v196_v46 }
  0xf5   :  { %231 = vst.msk [vmem:[%s388_s2 + $0x20] sm:$0xff] %vm16_vm0, %v223_v49  ;;  %v222_v51 = vsel %vm206_vm5, %v198_v41, %v214_v45  ;;  %vm208_vm8 = vcmp.gt.f32.partialorder %v200_v47, 0.0  ;;  %v216_v54 = vmul.f32 0.25, %v200_v47 }
  0xf6   :  { %230 = vst.msk [vmem:[%s388_s2 + $0x18] sm:$0xff] %vm16_vm0, %v222_v51  ;;  %v226_v53 = vsel %vm210_vm6, %v202_v42, %v218_v50  ;;  %v220_v55 = vsel %vm204_vm7, %v196_v46, %v212_v52 }
  0xf7   :  { %234 = vst.msk [vmem:[%s388_s2 + $0x38] sm:$0xff] %vm16_vm0, %v226_v53  ;;  %228 = vst.msk [vmem:[%s388_s2 + $0x8] sm:$0xff] %vm16_vm0, %v220_v55  ;;  %v224_v56 = vsel %vm208_vm8, %v200_v47, %v216_v54 }
  0xf8   :  { %232 = vst.msk [vmem:[%s388_s2 + $0x28] sm:$0xff] %vm16_vm0, %v224_v56 }

// kernel: dgi_forward.7
= control target key start
LH: loop header
LB: loop body
LE: loop exit
PB: predicated region body
PF: predicated region fallthrough
CT: control target
= control target key end

     0   :  { %vm29_vm0 = vcmask 261120   ;;  %vm364_vm2 = vcmask 64512   ;;  %s883_s0 = inlined_call_operand.vmem [shape: f32[64,64], index: 0, kind: input, shape index: {}]   ;;  %s884_s1 = inlined_call_operand.vmem [shape: f32[128,32], index: 1, kind: input, shape index: {}]   ;;  %s885_s3 = inlined_call_operand.vmem [shape: f32[64,8], index: 3, kind: output, shape index: {1}]   ;;  %s886_s2 = inlined_call_operand.vmem [shape: f32[64,8], index: 2, kind: output, shape index: {0}]  }
   0x1   :  { %v616_v0 = vld [vmem:[%s883_s0] sm:$0xff]  ;;  %v621_v1 = vld [vmem:[%s883_s0 + $0x8] sm:$0xff]  ;;  %v640_v6 = vld [vmem:[%s883_s0 + $0x10] sm:$0xff] }
   0x2   :  { %v21_v2 = vmul.f32 %v616_v0, %v616_v0  ;;  %v22_v3 = vmul.f32 %v621_v1, %v621_v1  ;;  %v630_v4 = vld [vmem:[%s883_s0 + $0x20] sm:$0xff]  ;;  %v635_v5 = vld [vmem:[%s883_s0 + $0x28] sm:$0xff]  ;;  %v649_v9 = vld [vmem:[%s883_s0 + $0x30] sm:$0xff]  ;;  %v23_v16 = vmul.f32 %v640_v6, %v640_v6 }
   0x3   :  { %v25_v7 = vmul.f32 %v630_v4, %v630_v4  ;;  %v26_v8 = vmul.f32 %v635_v5, %v635_v5  ;;  %v78_v12 = vld [vmem:[%s884_s1] sm:$0xff]  ;;  %v79_v13 = vld [vmem:[%s884_s1 + $0x8] sm:$0xff]  ;;  %v80_v14 = vld [vmem:[%s884_s1 + $0x10] sm:$0xff]  ;;  %v27_v20 = vmul.f32 %v649_v9, %v649_v9 }
   0x4   :  { %v30_v10 = vsel %vm29_vm0, %v21_v2, 0.0  ;;  %v33_v11 = vsel %vm29_vm0, %v22_v3, 0.0  ;;  %vm664_vm1 = vmpackc.low %vm29_vm0, %vm29_vm0  ;;  %v81_v17 = vld [vmem:[%s884_s1 + $0x18] sm:$0xff]  ;;  %v481_v21 = vpack.c.bf16 %v79_v13, %v78_v12  ;;  %v36_v25 = vsel %vm29_vm0, %v23_v16, 0.0  ;;  %v82_v29 = vld [vmem:[%s884_s1 + $0x20] sm:$0xff] }
   0x5   :  { %31 = vadd.xlane.f32.xlu0 %v30_v10  ;;  %34 = vadd.xlane.f32.xlu1 %v33_v11  ;;  %v42_v18 = vsel %vm29_vm0, %v25_v7, 0.0  ;;  %v45_v19 = vsel %vm29_vm0, %v26_v8, 0.0  ;;  %v680_v22 = vld [vmem:[%s883_s0 + $0x18] sm:$0xff]  ;;  %v487_v24 = vpack.c.bf16 %v81_v17, %v80_v14  ;;  %v48_v26 = vsel %vm29_vm0, %v27_v20, 0.0  ;;  %v83_v30 = vld [vmem:[%s884_s1 + $0x28] sm:$0xff]  ;;  %v84_v34 = vld [vmem:[%s884_s1 + $0x30] sm:$0xff] }
   0x6   :  { %v685_v23 = vld [vmem:[%s883_s0 + $0x38] sm:$0xff]  ;;  %483 = vmatprep.subr.msk.bf16.mxu0 %vm664_vm1, %v481_v21  ;;  %529 = vmatprep.subr.msk.bf16.mxu1 %vm664_vm1, %v481_v21  ;;  %v24_v27 = vmul.f32 %v680_v22, %v680_v22  ;;  %v493_v33 = vpack.c.bf16 %v83_v30, %v82_v29  ;;  %v86_v37 = vld [vmem:[%s884_s1 + $0x40] sm:$0xff]  ;;  %v87_v38 = vld [vmem:[%s884_s1 + $0x48] sm:$0xff] }
   0x7   :  { %v28_v28 = vmul.f32 %v685_v23, %v685_v23  ;;  %486 = vmatpush3.bf16.xpose.msk.msra.mxu0 %vm664_vm1, %v481_v21  ;;  %537 = vmatpush3.bf16.xpose.msk.msra.mxu1 %vm664_vm1, %v481_v21  ;;  %v85_v35 = vld [vmem:[%s884_s1 + $0x38] sm:$0xff]  ;;  %v505_v39 = vpack.c.bf16 %v87_v38, %v86_v37  ;;  %v88_v40 = vld [vmem:[%s884_s1 + $0x50] sm:$0xff]  ;;  %v90_v43 = vld [vmem:[%s884_s1 + $0x60] sm:$0xff] }
   0x8   :  { %489 = vmatprep.subr.msk.bf16.mxu0 %vm664_vm1, %v487_v24  ;;  %530 = vmatprep.subr.msk.bf16.mxu1 %vm664_vm1, %v487_v24  ;;  %v39_v31 = vsel %vm29_vm0, %v24_v27, 0.0  ;;  %v499_v36 = vpack.c.bf16 %v85_v35, %v84_v34  ;;  %v89_v41 = vld [vmem:[%s884_s1 + $0x58] sm:$0xff]  ;;  %v91_v44 = vld [vmem:[%s884_s1 + $0x68] sm:$0xff]  ;;  %v92_v46 = vld [vmem:[%s884_s1 + $0x70] sm:$0xff] }
   0x9   :  { %43 = vadd.xlane.f32.xlu0 %v42_v18  ;;  %46 = vadd.xlane.f32.xlu1 %v45_v19  ;;  %v51_v32 = vsel %vm29_vm0, %v28_v28, 0.0  ;;  %v511_v42 = vpack.c.bf16 %v89_v41, %v88_v40  ;;  %v517_v45 = vpack.c.bf16 %v91_v44, %v90_v43  ;;  %v93_v47 = vld [vmem:[%s884_s1 + $0x78] sm:$0xff]  ;;  %v271_v19 = vlaneseq }
   0xa   :  { %v523_v48 = vpack.c.bf16 %v93_v47, %v92_v46 }
   0xb   :  { %v272_v20 = vand.u32 127, %v271_v19 }
   0xd   :  { %37 = vadd.xlane.f32.xlu0 %v36_v25  ;;  %49 = vadd.xlane.f32.xlu1 %v48_v26  ;;  %vm273_vm3 = vcmp.lt.s32.totalorder %v272_v20, 8 }
   0xf   :  { %492 = vmatpush3.bf16.xpose.msk.msra.mxu0 %vm664_vm1, %v487_v24  ;;  %538 = vmatpush3.bf16.xpose.msk.msra.mxu1 %vm664_vm1, %v487_v24 }
  0x10   :  { %495 = vmatprep.subr.msk.bf16.mxu0 %vm664_vm1, %v493_v33  ;;  %531 = vmatprep.subr.msk.bf16.mxu1 %vm664_vm1, %v493_v33 }
  0x11   :  { %40 = vadd.xlane.f32.xlu0 %v39_v31  ;;  %52 = vadd.xlane.f32.xlu1 %v51_v32 }
  0x17   :  { %498 = vmatpush3.bf16.xpose.msk.msra.mxu0 %vm664_vm1, %v493_v33  ;;  %539 = vmatpush3.bf16.xpose.msk.msra.mxu1 %vm664_vm1, %v493_v33 }
  0x18   :  { %501 = vmatprep.subr.msk.bf16.mxu0 %vm664_vm1, %v499_v36  ;;  %532 = vmatprep.subr.msk.bf16.mxu1 %vm664_vm1, %v499_v36 }
  0x1f   :  { %504 = vmatpush3.bf16.xpose.msk.msra.mxu0 %vm664_vm1, %v499_v36  ;;  %540 = vmatpush3.bf16.xpose.msk.msra.mxu1 %vm664_vm1, %v499_v36 }
  0x20   :  { %507 = vmatprep.subr.msk.bf16.mxu0 %vm664_vm1, %v505_v39  ;;  %533 = vmatprep.subr.msk.bf16.mxu1 %vm664_vm1, %v505_v39 }
  0x27   :  { %510 = vmatpush3.bf16.xpose.msk.msra.mxu0 %vm664_vm1, %v505_v39  ;;  %541 = vmatpush3.bf16.xpose.msk.msra.mxu1 %vm664_vm1, %v505_v39 }
  0x28   :  { %513 = vmatprep.subr.msk.bf16.mxu0 %vm664_vm1, %v511_v42  ;;  %534 = vmatprep.subr.msk.bf16.mxu1 %vm664_vm1, %v511_v42 }
  0x2f   :  { %516 = vmatpush3.bf16.xpose.msk.msra.mxu0 %vm664_vm1, %v511_v42  ;;  %542 = vmatpush3.bf16.xpose.msk.msra.mxu1 %vm664_vm1, %v511_v42 }
  0x30   :  { %519 = vmatprep.subr.msk.bf16.mxu0 %vm664_vm1, %v517_v45  ;;  %535 = vmatprep.subr.msk.bf16.mxu1 %vm664_vm1, %v517_v45 }
  0x37   :  { %522 = vmatpush3.bf16.xpose.msk.msra.mxu0 %vm664_vm1, %v517_v45  ;;  %543 = vmatpush3.bf16.xpose.msk.msra.mxu1 %vm664_vm1, %v517_v45 }
  0x38   :  { %525 = vmatprep.subr.msk.bf16.mxu0 %vm664_vm1, %v523_v48  ;;  %536 = vmatprep.subr.msk.bf16.mxu1 %vm664_vm1, %v523_v48 }
  0x3f   :  { %528 = vmatpush3.bf16.xpose.msk.msra.mxu0 %vm664_vm1, %v523_v48  ;;  %544 = vmatpush3.bf16.xpose.msk.msra.mxu1 %vm664_vm1, %v523_v48 }
  0x92   :  { %v32_v49 = vpop.xlane.xlu0 %31  ;;  %v35_v50 = vpop.xlane.xlu1 %34 }
  0x93   :  { %v54_v51 = vadd.f32 1e-12, %v32_v49  ;;  %v55_v52 = vadd.f32 1e-12, %v35_v50 }
  0x95   :  { %545 = vrsqrt.f32 %v54_v51 }
  0x96   :  { %547 = vrsqrt.f32 %v55_v52  ;;  %v44_v53 = vpop.xlane.xlu0 %43  ;;  %v47_v54 = vpop.xlane.xlu1 %46 }
  0x97   :  { %v58_v55 = vadd.f32 1e-12, %v44_v53  ;;  %v59_v56 = vadd.f32 1e-12, %v47_v54 }
  0x99   :  { %549 = vrsqrt.f32 %v58_v55 }
  0x9a   :  { %551 = vrsqrt.f32 %v59_v56  ;;  %v38_v57 = vpop.xlane.xlu0 %37  ;;  %v50_v58 = vpop.xlane.xlu1 %49 }
  0x9b   :  { %v56_v59 = vadd.f32 1e-12, %v38_v57  ;;  %v60_v60 = vadd.f32 1e-12, %v50_v58 }
  0x9d   :  { %553 = vrsqrt.f32 %v56_v59 }
  0x9e   :  { %555 = vrsqrt.f32 %v60_v60  ;;  %v41_v61 = vpop.xlane.xlu0 %40  ;;  %v53_v62 = vpop.xlane.xlu1 %52 }
  0x9f   :  { %v546_v63 = vpop.eup %545  ;;  %v57_v2 = vadd.f32 1e-12, %v41_v61  ;;  %v61_v3 = vadd.f32 1e-12, %v53_v62 }
  0xa0   :  { %v548_v7 = vpop.eup %547  ;;  %v70_v8 = vmul.f32 %v546_v63, %v616_v0 }
  0xa1   :  { %557 = vrsqrt.f32 %v57_v2  ;;  %v71_v10 = vmul.f32 %v548_v7, %v621_v1 }
  0xa2   :  { %559 = vrsqrt.f32 %v61_v3  ;;  %469 = vmatprep.mubr.msk.f32.mxu0 %vm29_vm0, %v70_v8 }
  0xa3   :  { %v550_v11 = vpop.eup %549  ;;  %470 = vmatmul.mubr.msk.f32.vlgmr.msra.gmra.mrb[0].mxu0 %vm29_vm0, %v71_v10 }
  0xa4   :  { %v552_v12 = vpop.eup %551  ;;  %v74_v13 = vmul.f32 %v550_v11, %v630_v4 }
  0xa5   :  { %v75_v14 = vmul.f32 %v552_v12, %v635_v5 }
  0xa6   :  { %475 = vmatprep.mubr.msk.f32.mxu1 %vm29_vm0, %v74_v13 }
  0xa7   :  { %v554_v15 = vpop.eup %553  ;;  %476 = vmatmul.mubr.msk.f32.vlgmr.msra.gmra.mrb[0].mxu1 %vm29_vm0, %v75_v14 }
  0xa8   :  { %v556_v0 = vpop.eup %555  ;;  %v72_v16 = vmul.f32 %v554_v15, %v640_v6 }
  0xa9   :  { %v76_v1 = vmul.f32 %v556_v0, %v649_v9 }
  0xaa   :  { %472 = vmatprep.mubr.msk.f32.mxu0 %vm29_vm0, %v72_v16 }
  0xab   :  { %v558_v17 = vpop.eup %557  ;;  %478 = vmatprep.mubr.msk.f32.mxu1 %vm29_vm0, %v76_v1 }
  0xac   :  { %v560_v18 = vpop.eup %559  ;;  %v73_v4 = vmul.f32 %v558_v17, %v680_v22 }
  0xad   :  { %v77_v5 = vmul.f32 %v560_v18, %v685_v23 }
  0xae   :  { %473 = vmatmul.mubr.msk.f32.gmra.mrb[2].mxu0 %vm29_vm0, %v73_v4 }
  0xaf   :  { %479 = vmatmul.mubr.msk.f32.gmra.mrb[2].mxu1 %vm29_vm0, %v77_v5 }
 0x176   :  { %v471_v6 = vpop.f32.mrb[0].mxu0 }
 0x177   :  { %v275_v9 = vmul.f32 5.0, %v471_v6  ;;  %374 = vst.msk [vmem:[%s885_s3 + $0x8] sm:$0xff] %vm364_vm2, %v471_v6  ;;  %v232_v21 = vpop.f32.mrb[1].mxu0 }
 0x178   :  { %v274_v24 = vmul.f32 5.0, %v232_v21  ;;  %373 = vst.msk [vmem:[%s885_s3] sm:$0xff] %vm364_vm2, %v232_v21 }
 0x179   :  { %v285_v22 = vsel %vm273_vm3, %v275_v9, -1e+30 }
 0x17a   :  { %294 = vmax.xlane.f32.xlu1 %v285_v22  ;;  %v477_v23 = vpop.f32.mrb[0].mxu1  ;;  %v284_v25 = vsel %vm273_vm3, %v274_v24, -1e+30 }
 0x17b   :  { %v279_v26 = vmul.f32 5.0, %v477_v23  ;;  %378 = vst.msk [vmem:[%s885_s3 + $0x28] sm:$0xff] %vm364_vm2, %v477_v23  ;;  %292 = vmax.xlane.f32.xlu0 %v284_v25  ;;  %v252_v27 = vpop.f32.mrb[1].mxu1 }
 0x17c   :  { %v278_v28 = vmul.f32 5.0, %v252_v27  ;;  %377 = vst.msk [vmem:[%s885_s3 + $0x20] sm:$0xff] %vm364_vm2, %v252_v27 }
 0x17d   :  { %v289_v29 = vsel %vm273_vm3, %v279_v26, -1e+30 }
 0x17e   :  { %302 = vmax.xlane.f32.xlu1 %v289_v29  ;;  %v288_v30 = vsel %vm273_vm3, %v278_v28, -1e+30 }
 0x17f   :  { %300 = vmax.xlane.f32.xlu0 %v288_v30 }
 0x181   :  { %v474_v31 = vpop.f32.mrb[2].mxu0 }
 0x182   :  { %v277_v32 = vmul.f32 5.0, %v474_v31  ;;  %376 = vst.msk [vmem:[%s885_s3 + $0x18] sm:$0xff] %vm364_vm2, %v474_v31  ;;  %v242_v33 = vpop.f32.mrb[3].mxu0  ;;  %v480_v34 = vpop.f32.mrb[2].mxu1 }
 0x183   :  { %v276_v35 = vmul.f32 5.0, %v242_v33  ;;  %375 = vst.msk [vmem:[%s885_s3 + $0x10] sm:$0xff] %vm364_vm2, %v242_v33  ;;  %v281_v36 = vmul.f32 5.0, %v480_v34  ;;  %380 = vst.msk [vmem:[%s885_s3 + $0x38] sm:$0xff] %vm364_vm2, %v480_v34  ;;  %v262_v37 = vpop.f32.mrb[3].mxu1 }
 0x184   :  { %v280_v38 = vmul.f32 5.0, %v262_v37  ;;  %379 = vst.msk [vmem:[%s885_s3 + $0x30] sm:$0xff] %vm364_vm2, %v262_v37  ;;  %v287_v39 = vsel %vm273_vm3, %v277_v32, -1e+30 }
 0x185   :  { %298 = vmax.xlane.f32.xlu1 %v287_v39  ;;  %v286_v40 = vsel %vm273_vm3, %v276_v35, -1e+30  ;;  %v291_v41 = vsel %vm273_vm3, %v281_v36, -1e+30 }
 0x186   :  { %296 = vmax.xlane.f32.xlu0 %v286_v40  ;;  %v290_v42 = vsel %vm273_vm3, %v280_v38, -1e+30 }
 0x189   :  { %306 = vmax.xlane.f32.xlu1 %v291_v41 }
 0x18a   :  { %304 = vmax.xlane.f32.xlu0 %v290_v42 }
 0x207   :  { %v295_v43 = vpop.xlane.xlu1 %294 }
 0x208   :  { %v309_v44 = vsub.f32 %v285_v22, %v295_v43  ;;  %v293_v45 = vpop.xlane.xlu0 %292 }
 0x209   :  { %v308_v46 = vsub.f32 %v284_v25, %v293_v45 }
 0x20a   :  { %v318_v47 = vmul.f32 1.442695, %v309_v44 }
 0x20b   :  { %v316_v48 = vmul.f32 1.442695, %v308_v46  ;;  %v303_v49 = vpop.xlane.xlu1 %302 }
 0x20c   :  { %561 = vpow2.f32 %v318_v47  ;;  %v313_v50 = vsub.f32 %v289_v29, %v303_v49  ;;  %v301_v51 = vpop.xlane.xlu0 %300 }
 0x20d   :  { %563 = vpow2.f32 %v316_v48  ;;  %v312_v52 = vsub.f32 %v288_v30, %v301_v51 }
 0x20e   :  { %v326_v53 = vmul.f32 1.442695, %v313_v50 }
 0x20f   :  { %v324_v54 = vmul.f32 1.442695, %v312_v52 }
 0x210   :  { %565 = vpow2.f32 %v326_v53 }
 0x211   :  { %567 = vpow2.f32 %v324_v54 }
 0x212   :  { %v299_v55 = vpop.xlane.xlu1 %298 }
 0x213   :  { %v311_v56 = vsub.f32 %v287_v39, %v299_v55  ;;  %v297_v57 = vpop.xlane.xlu0 %296 }
 0x214   :  { %v310_v58 = vsub.f32 %v286_v40, %v297_v57 }
 0x215   :  { %v322_v59 = vmul.f32 1.442695, %v311_v56 }
 0x216   :  { %v562_v60 = vpop.eup %561  ;;  %v320_v61 = vmul.f32 1.442695, %v310_v58  ;;  %v307_v62 = vpop.xlane.xlu1 %306 }
 0x217   :  { %v564_v63 = vpop.eup %563  ;;  %569 = vpow2.f32 %v322_v59  ;;  %v315_v2 = vsub.f32 %v291_v41, %v307_v62  ;;  %334 = vadd.xlane.f32.xlu1 %v562_v60  ;;  %v305_v3 = vpop.xlane.xlu0 %304 }
 0x218   :  { %571 = vpow2.f32 %v320_v61  ;;  %v314_v7 = vsub.f32 %v290_v42, %v305_v3  ;;  %332 = vadd.xlane.f32.xlu0 %v564_v63 }
 0x219   :  { %v330_v8 = vmul.f32 1.442695, %v315_v2 }
 0x21a   :  { %v566_v10 = vpop.eup %565  ;;  %v328_v11 = vmul.f32 1.442695, %v314_v7 }
 0x21b   :  { %v568_v12 = vpop.eup %567  ;;  %573 = vpow2.f32 %v330_v8  ;;  %342 = vadd.xlane.f32.xlu1 %v566_v10 }
 0x21c   :  { %575 = vpow2.f32 %v328_v11  ;;  %340 = vadd.xlane.f32.xlu0 %v568_v12 }
 0x221   :  { %v570_v13 = vpop.eup %569 }
 0x222   :  { %v572_v14 = vpop.eup %571  ;;  %338 = vadd.xlane.f32.xlu1 %v570_v13 }
 0x223   :  { %336 = vadd.xlane.f32.xlu0 %v572_v14 }
 0x225   :  { %v574_v15 = vpop.eup %573 }
 0x226   :  { %v576_v0 = vpop.eup %575  ;;  %346 = vadd.xlane.f32.xlu1 %v574_v15 }
 0x227   :  { %344 = vadd.xlane.f32.xlu0 %v576_v0 }
 0x2a4   :  { %v335_v16 = vpop.xlane.xlu1 %334 }
 0x2a5   :  { %577 = vrcp.f32 %v335_v16  ;;  %v333_v1 = vpop.xlane.xlu0 %332 }
 0x2a6   :  { %579 = vrcp.f32 %v333_v1 }
 0x2a8   :  { %v343_v17 = vpop.xlane.xlu1 %342 }
 0x2a9   :  { %581 = vrcp.f32 %v343_v17  ;;  %v341_v18 = vpop.xlane.xlu0 %340 }
 0x2aa   :  { %583 = vrcp.f32 %v341_v18 }
 0x2af   :  { %v578_v4 = vpop.eup %577  ;;  %v339_v5 = vpop.xlane.xlu1 %338 }
 0x2b0   :  { %v580_v19 = vpop.eup %579  ;;  %v351_v20 = vmul.f32 %v578_v4, %v562_v60  ;;  %585 = vrcp.f32 %v339_v5  ;;  %v337_v6 = vpop.xlane.xlu0 %336 }
 0x2b1   :  { %v349_v9 = vmul.f32 %v580_v19, %v564_v63  ;;  %587 = vrcp.f32 %v337_v6 }
 0x2b2   :  { %366 = vst.msk [vmem:[%s886_s2 + $0x8] sm:$0xff] %vm364_vm2, %v351_v20 }
 0x2b3   :  { %v582_v21 = vpop.eup %581  ;;  %365 = vst.msk [vmem:[%s886_s2] sm:$0xff] %vm364_vm2, %v349_v9  ;;  %v347_v24 = vpop.xlane.xlu1 %346 }
 0x2b4   :  { %v584_v22 = vpop.eup %583  ;;  %v359_v23 = vmul.f32 %v582_v21, %v566_v10  ;;  %589 = vrcp.f32 %v347_v24  ;;  %v345_v25 = vpop.xlane.xlu0 %344 }
 0x2b5   :  { %v357_v26 = vmul.f32 %v584_v22, %v568_v12  ;;  %591 = vrcp.f32 %v345_v25 }
 0x2b6   :  { %370 = vst.msk [vmem:[%s886_s2 + $0x28] sm:$0xff] %vm364_vm2, %v359_v23 }
 0x2b7   :  { %369 = vst.msk [vmem:[%s886_s2 + $0x20] sm:$0xff] %vm364_vm2, %v357_v26 }
 0x2ba   :  { %v586_v27 = vpop.eup %585 }
 0x2bb   :  { %v588_v28 = vpop.eup %587  ;;  %v355_v29 = vmul.f32 %v586_v27, %v570_v13 }
 0x2bc   :  { %v353_v30 = vmul.f32 %v588_v28, %v572_v14 }
 0x2bd   :  { %368 = vst.msk [vmem:[%s886_s2 + $0x18] sm:$0xff] %vm364_vm2, %v355_v29 }
 0x2be   :  { %v590_v31 = vpop.eup %589  ;;  %367 = vst.msk [vmem:[%s886_s2 + $0x10] sm:$0xff] %vm364_vm2, %v353_v30 }
 0x2bf   :  { %v592_v32 = vpop.eup %591  ;;  %v363_v33 = vmul.f32 %v590_v31, %v574_v15 }
 0x2c0   :  { %v361_v34 = vmul.f32 %v592_v32, %v576_v0 }
 0x2c1   :  { %372 = vst.msk [vmem:[%s886_s2 + $0x38] sm:$0xff] %vm364_vm2, %v363_v33 }
 0x2c2   :  { %371 = vst.msk [vmem:[%s886_s2 + $0x30] sm:$0xff] %vm364_vm2, %v361_v34 }

// kernel: dgi_forward.6
= control target key start
LH: loop header
LB: loop body
LE: loop exit
PB: predicated region body
PF: predicated region fallthrough
CT: control target
= control target key end

     0   :  { %vm21_vm0 = vcmask 261120   ;;  %s1568_s0 = inlined_call_operand.vmem [shape: f32[64,64], index: 0, kind: input, shape index: {}]   ;;  %s1569_s1 = inlined_call_operand.vmem [shape: f32[128,32], index: 1, kind: input, shape index: {}]   ;;  %s1570_s2 = inlined_call_operand.hbm [shape: f32[1,32], index: 2, kind: output, shape index: {0}]   ;;  %s1571_s3 = inlined_call_operand.vmem [shape: f32[128,32], index: 3, kind: output, shape index: {1}]   ;;  %s1572_s4 = inlined_call_operand.vmem [shape: f32[1,128], index: 4, kind: output, shape index: {2}]  }
   0x1   :  { %v1143_v0 = vld [vmem:[%s1568_s0] sm:$0xff]  ;;  %v1148_v1 = vld [vmem:[%s1568_s0 + $0x10] sm:$0xff]  ;;  %v1153_v2 = vld [vmem:[%s1568_s0 + $0x8] sm:$0xff] }
   0x2   :  { %v124_v3 = vmul.f32 %v1143_v0, %v1143_v0  ;;  %v126_v4 = vmul.f32 %v1148_v1, %v1148_v1  ;;  %v1162_v5 = vld [vmem:[%s1568_s0 + $0x18] sm:$0xff]  ;;  %v125_v6 = vmul.f32 %v1153_v2, %v1153_v2  ;;  %v1171_v8 = vld [vmem:[%s1568_s0 + $0x20] sm:$0xff]  ;;  %v1176_v9 = vld [vmem:[%s1568_s0 + $0x28] sm:$0xff] }
   0x3   :  { %v127_v7 = vmul.f32 %v1162_v5, %v1162_v5  ;;  %v183_v12 = vld [vmem:[%s1569_s1] sm:$0xff]  ;;  %v184_v13 = vld [vmem:[%s1569_s1 + $0x8] sm:$0xff]  ;;  %v185_v14 = vld [vmem:[%s1569_s1 + $0x10] sm:$0xff]  ;;  %v128_v18 = vmul.f32 %v1171_v8, %v1171_v8  ;;  %v129_v19 = vmul.f32 %v1176_v9, %v1176_v9 }
   0x4   :  { %v132_v10 = vsel %vm21_vm0, %v124_v3, 0.0  ;;  %v138_v11 = vsel %vm21_vm0, %v126_v4, 0.0  ;;  %v186_v15 = vld [vmem:[%s1569_s1 + $0x18] sm:$0xff]  ;;  %v135_v16 = vsel %vm21_vm0, %v125_v6, 0.0  ;;  %v1201_v20 = vld [vmem:[%s1568_s0 + $0x30] sm:$0xff]  ;;  %vm1210_vm1 = vmpackc.low %vm21_vm0, %vm21_vm0  ;;  %v971_v23 = vpack.c.bf16 %v184_v13, %v183_v12 }
   0x5   :  { %133 = vadd.xlane.f32.xlu0 %v132_v10  ;;  %139 = vadd.xlane.f32.xlu1 %v138_v11  ;;  %v141_v17 = vsel %vm21_vm0, %v127_v7, 0.0  ;;  %v1206_v21 = vld [vmem:[%s1568_s0 + $0x38] sm:$0xff]  ;;  %v977_v24 = vpack.c.bf16 %v186_v15, %v185_v14 }
   0x6   :  { %10 = vsyncpa [#allocation3], 0  ;;  %v144_v25 = vsel %vm21_vm0, %v128_v18, 0.0  ;;  %v147_v26 = vsel %vm21_vm0, %v129_v19, 0.0  ;;  %v130_v27 = vmul.f32 %v1201_v20, %v1201_v20  ;;  %v131_v28 = vmul.f32 %v1206_v21, %v1206_v21  ;;  %973 = vmatprep.subr.msk.bf16.mxu0 %vm1210_vm1, %v971_v23  ;;  %v187_v29 = vld [vmem:[%s1569_s1 + $0x20] sm:$0xff]  ;;  %v188_v30 = vld [vmem:[%s1569_s1 + $0x28] sm:$0xff] }
   0x7   :  { %976 = vmatpush3.bf16.xpose.msk.msra.mxu0 %vm1210_vm1, %v971_v23  ;;  %v983_v33 = vpack.c.bf16 %v188_v30, %v187_v29  ;;  %v189_v34 = vld [vmem:[%s1569_s1 + $0x30] sm:$0xff]  ;;  %v190_v35 = vld [vmem:[%s1569_s1 + $0x38] sm:$0xff]  ;;  %v191_v37 = vld [vmem:[%s1569_s1 + $0x40] sm:$0xff]  ;;  %v180_v29 = vlaneseq  ;;  %vm522_vm3 = vcmask 523264   ;;  %vm19_vm4 = vcmask 253952  }
   0x8   :  { %979 = vmatprep.subr.msk.bf16.mxu0 %vm1210_vm1, %v977_v24  ;;  %v150_v31 = vsel %vm21_vm0, %v130_v27, 0.0  ;;  %v153_v32 = vsel %vm21_vm0, %v131_v28, 0.0  ;;  %v989_v36 = vpack.c.bf16 %v190_v35, %v189_v34  ;;  %v192_v38 = vld [vmem:[%s1569_s1 + $0x48] sm:$0xff]  ;;  %v193_v40 = vld [vmem:[%s1569_s1 + $0x50] sm:$0xff]  ;;  %v194_v41 = vld [vmem:[%s1569_s1 + $0x58] sm:$0xff] }
   0x9   :  { %136 = vadd.xlane.f32.xlu0 %v135_v16  ;;  %142 = vadd.xlane.f32.xlu1 %v141_v17  ;;  %v995_v39 = vpack.c.bf16 %v192_v38, %v191_v37  ;;  %v1001_v42 = vpack.c.bf16 %v194_v41, %v193_v40  ;;  %v195_v43 = vld [vmem:[%s1569_s1 + $0x60] sm:$0xff]  ;;  %v196_v44 = vld [vmem:[%s1569_s1 + $0x68] sm:$0xff]  ;;  %v197_v46 = vld [vmem:[%s1569_s1 + $0x70] sm:$0xff]  ;;  %v181_v30 = vand.u32 127, %v180_v29 }
   0xa   :  { %v1007_v45 = vpack.c.bf16 %v196_v44, %v195_v43  ;;  %v198_v47 = vld [vmem:[%s1569_s1 + $0x78] sm:$0xff] }
   0xb   :  { %v1013_v48 = vpack.c.bf16 %v198_v47, %v197_v46  ;;  %vm182_vm2 = vcmp.lt.s32.totalorder %v181_v30, 8 }
   0xd   :  { %145 = vadd.xlane.f32.xlu0 %v144_v25  ;;  %148 = vadd.xlane.f32.xlu1 %v147_v26 }
   0xf   :  { %982 = vmatpush3.bf16.xpose.msk.msra.mxu0 %vm1210_vm1, %v977_v24 }
  0x10   :  { %985 = vmatprep.subr.msk.bf16.mxu0 %vm1210_vm1, %v983_v33 }
  0x11   :  { %151 = vadd.xlane.f32.xlu0 %v150_v31  ;;  %154 = vadd.xlane.f32.xlu1 %v153_v32 }
  0x17   :  { %988 = vmatpush3.bf16.xpose.msk.msra.mxu0 %vm1210_vm1, %v983_v33 }
  0x18   :  { %991 = vmatprep.subr.msk.bf16.mxu0 %vm1210_vm1, %v989_v36 }
  0x1f   :  { %994 = vmatpush3.bf16.xpose.msk.msra.mxu0 %vm1210_vm1, %v989_v36 }
  0x20   :  { %997 = vmatprep.subr.msk.bf16.mxu0 %vm1210_vm1, %v995_v39 }
  0x27   :  { %1000 = vmatpush3.bf16.xpose.msk.msra.mxu0 %vm1210_vm1, %v995_v39 }
  0x28   :  { %1003 = vmatprep.subr.msk.bf16.mxu0 %vm1210_vm1, %v1001_v42 }
  0x2f   :  { %1006 = vmatpush3.bf16.xpose.msk.msra.mxu0 %vm1210_vm1, %v1001_v42 }
  0x30   :  { %1009 = vmatprep.subr.msk.bf16.mxu0 %vm1210_vm1, %v1007_v45 }
  0x37   :  { %1012 = vmatpush3.bf16.xpose.msk.msra.mxu0 %vm1210_vm1, %v1007_v45 }
  0x38   :  { %1015 = vmatprep.subr.msk.bf16.mxu0 %vm1210_vm1, %v1013_v48 }
  0x3f   :  { %1018 = vmatpush3.bf16.xpose.msk.msra.mxu0 %vm1210_vm1, %v1013_v48 }
  0x92   :  { %v134_v49 = vpop.xlane.xlu0 %133  ;;  %v140_v50 = vpop.xlane.xlu1 %139 }
  0x93   :  { %v156_v51 = vadd.f32 1e-12, %v134_v49  ;;  %v158_v52 = vadd.f32 1e-12, %v140_v50 }
  0x95   :  { %1037 = vrsqrt.f32 %v156_v51 }
  0x96   :  { %1039 = vrsqrt.f32 %v158_v52  ;;  %v137_v53 = vpop.xlane.xlu0 %136  ;;  %v143_v54 = vpop.xlane.xlu1 %142 }
  0x97   :  { %v157_v55 = vadd.f32 1e-12, %v137_v53  ;;  %v159_v56 = vadd.f32 1e-12, %v143_v54 }
  0x99   :  { %1041 = vrsqrt.f32 %v157_v55 }
  0x9a   :  { %1043 = vrsqrt.f32 %v159_v56  ;;  %v146_v57 = vpop.xlane.xlu0 %145  ;;  %v149_v58 = vpop.xlane.xlu1 %148 }
  0x9b   :  { %v160_v59 = vadd.f32 1e-12, %v146_v57  ;;  %v161_v60 = vadd.f32 1e-12, %v149_v58 }
  0x9d   :  { %1045 = vrsqrt.f32 %v160_v59 }
  0x9e   :  { %1047 = vrsqrt.f32 %v161_v60  ;;  %v152_v61 = vpop.xlane.xlu0 %151  ;;  %v155_v62 = vpop.xlane.xlu1 %154 }
  0x9f   :  { %v1038_v63 = vpop.eup %1037  ;;  %v162_v3 = vadd.f32 1e-12, %v152_v61  ;;  %v163_v4 = vadd.f32 1e-12, %v155_v62 }
  0xa0   :  { %v1040_v6 = vpop.eup %1039  ;;  %v172_v7 = vmul.f32 %v1038_v63, %v1143_v0 }
  0xa1   :  { %1049 = vrsqrt.f32 %v162_v3  ;;  %v174_v11 = vmul.f32 %v1040_v6, %v1148_v1 }
  0xa2   :  { %1051 = vrsqrt.f32 %v163_v4  ;;  %919 = vmatprep.mubr.msk.f32.mxu0 %vm21_vm0, %v172_v7 }
  0xa3   :  { %v1042_v10 = vpop.eup %1041 }
  0xa4   :  { %v1044_v12 = vpop.eup %1043  ;;  %v173_v13 = vmul.f32 %v1042_v10, %v1153_v2 }
  0xa5   :  { %v175_v14 = vmul.f32 %v1044_v12, %v1162_v5 }
  0xa6   :  { %920 = vmatmul.mubr.msk.f32.vlgmr.msra.gmra.mrb[0].mxu0 %vm21_vm0, %v173_v13  ;;  %v1019_v15 = vpack.c.bf16 %v173_v13, %v172_v7 }
  0xa7   :  { %v1046_v16 = vpop.eup %1045  ;;  %922 = vmatprep.mubr.msk.f32.mxu0 %vm21_vm0, %v174_v11  ;;  %v1023_v17 = vpack.c.bf16 %v175_v14, %v174_v11 }
  0xa8   :  { %v1048_v18 = vpop.eup %1047  ;;  %1020 = vmatprep.subr.bf16.mxu1 %v1019_v15  ;;  %v176_v19 = vmul.f32 %v1046_v16, %v1171_v8 }
  0xa9   :  { %1022 = vmatpush3.bf16.msra.mxu1 %v1019_v15  ;;  %v177_v22 = vmul.f32 %v1048_v18, %v1176_v9 }
  0xaa   :  { %923 = vmatmul.mubr.msk.f32.gmra.mrb[2].mxu0 %vm21_vm0, %v175_v14  ;;  %1024 = vmatprep.subr.bf16.mxu1 %v1023_v17 }
  0xab   :  { %v1050_v23 = vpop.eup %1049  ;;  %925 = vmatprep.mubr.msk.f32.mxu0 %vm21_vm0, %v176_v19  ;;  %v1027_v24 = vpack.c.bf16 %v177_v22, %v176_v19 }
  0xac   :  { %v1052_v25 = vpop.eup %1051  ;;  %v178_v26 = vmul.f32 %v1050_v23, %v1201_v20 }
  0xad   :  { %1026 = vmatpush3.bf16.msra.mxu1 %v1023_v17  ;;  %v179_v27 = vmul.f32 %v1052_v25, %v1206_v21 }
  0xae   :  { %926 = vmatmul.mubr.msk.f32.gmra.mrb[4].mxu0 %vm21_vm0, %v177_v22  ;;  %1028 = vmatprep.subr.bf16.mxu1 %v1027_v24 }
  0xaf   :  { %928 = vmatprep.mubr.msk.f32.mxu0 %vm21_vm0, %v178_v26  ;;  %v1031_v28 = vpack.c.bf16 %v179_v27, %v178_v26 }
  0xb1   :  { %1030 = vmatpush3.bf16.msra.mxu1 %v1027_v24 }
  0xb2   :  { %929 = vmatmul.mubr.msk.f32.gmra.mrb[6].mxu0 %vm21_vm0, %v179_v27  ;;  %1032 = vmatprep.subr.bf16.mxu1 %v1031_v28 }
  0xb5   :  { %1034 = vmatpush3.bf16.msra.mxu1 %v1031_v28 }
 0x179   :  { %v921_v31 = vpop.f32.mrb[0].mxu0 }
 0x17a   :  { %v377_v32 = vmul.f32 5.0, %v921_v31  ;;  %v337_v33 = vpop.f32.mrb[1].mxu0  ;;  %v1113_v31 = vmov 0.0  }
 0x17b   :  { %v376_v34 = vmul.f32 5.0, %v337_v33  ;;  %38 = vst [vmem:[%s1572_s4] sm:$0x1] %v1113_v31  ;;  %22 = vst.msk [vmem:[%s1571_s3] sm:$0xff] %vm21_vm0, %v1113_v31 }
 0x17c   :  { %v387_v35 = vsel %vm182_vm2, %v377_v32, -1e+30  ;;  %23 = vst.msk [vmem:[%s1571_s3 + $0x8] sm:$0xff] %vm21_vm0, %v1113_v31  ;;  %24 = vst.msk [vmem:[%s1571_s3 + $0x10] sm:$0xff] %vm21_vm0, %v1113_v31 }
 0x17d   :  { %396 = vmax.xlane.f32.xlu1 %v387_v35  ;;  %v924_v36 = vpop.f32.mrb[2].mxu0  ;;  %v386_v37 = vsel %vm182_vm2, %v376_v34, -1e+30  ;;  %25 = vst.msk [vmem:[%s1571_s3 + $0x18] sm:$0xff] %vm21_vm0, %v1113_v31  ;;  %26 = vst.msk [vmem:[%s1571_s3 + $0x20] sm:$0xff] %vm21_vm0, %v1113_v31 }
 0x17e   :  { %v379_v38 = vmul.f32 5.0, %v924_v36  ;;  %394 = vmax.xlane.f32.xlu0 %v386_v37  ;;  %v347_v39 = vpop.f32.mrb[3].mxu0  ;;  %27 = vst.msk [vmem:[%s1571_s3 + $0x28] sm:$0xff] %vm21_vm0, %v1113_v31  ;;  %28 = vst.msk [vmem:[%s1571_s3 + $0x30] sm:$0xff] %vm21_vm0, %v1113_v31 }
 0x17f   :  { %v378_v40 = vmul.f32 5.0, %v347_v39  ;;  %29 = vst.msk [vmem:[%s1571_s3 + $0x38] sm:$0xff] %vm21_vm0, %v1113_v31  ;;  %30 = vst.msk [vmem:[%s1571_s3 + $0x40] sm:$0xff] %vm21_vm0, %v1113_v31 }
 0x180   :  { %v389_v41 = vsel %vm182_vm2, %v379_v38, -1e+30  ;;  %31 = vst.msk [vmem:[%s1571_s3 + $0x48] sm:$0xff] %vm21_vm0, %v1113_v31  ;;  %32 = vst.msk [vmem:[%s1571_s3 + $0x50] sm:$0xff] %vm21_vm0, %v1113_v31 }
 0x181   :  { %400 = vmax.xlane.f32.xlu1 %v389_v41  ;;  %v927_v42 = vpop.f32.mrb[4].mxu0  ;;  %v388_v43 = vsel %vm182_vm2, %v378_v40, -1e+30  ;;  %33 = vst.msk [vmem:[%s1571_s3 + $0x58] sm:$0xff] %vm21_vm0, %v1113_v31  ;;  %34 = vst.msk [vmem:[%s1571_s3 + $0x60] sm:$0xff] %vm21_vm0, %v1113_v31 }
 0x182   :  { %v381_v44 = vmul.f32 5.0, %v927_v42  ;;  %398 = vmax.xlane.f32.xlu0 %v388_v43  ;;  %v357_v45 = vpop.f32.mrb[5].mxu0  ;;  %35 = vst.msk [vmem:[%s1571_s3 + $0x68] sm:$0xff] %vm21_vm0, %v1113_v31  ;;  %36 = vst.msk [vmem:[%s1571_s3 + $0x70] sm:$0xff] %vm21_vm0, %v1113_v31 }
 0x183   :  { %v380_v46 = vmul.f32 5.0, %v357_v45  ;;  %37 = vst.msk [vmem:[%s1571_s3 + $0x78] sm:$0xff] %vm21_vm0, %v1113_v31 }
 0x184   :  { %v391_v47 = vsel %vm182_vm2, %v381_v44, -1e+30  ;;  %20 = vst.msk [vmem:[#allocation2] sm:$0x1] %vm19_vm4, %v1113_v31 }
 0x185   :  { %404 = vmax.xlane.f32.xlu1 %v391_v47  ;;  %v930_v48 = vpop.f32.mrb[6].mxu0  ;;  %v390_v49 = vsel %vm182_vm2, %v380_v46, -1e+30 }
 0x186   :  { %v383_v50 = vmul.f32 5.0, %v930_v48  ;;  %402 = vmax.xlane.f32.xlu0 %v390_v49  ;;  %v367_v51 = vpop.f32.mrb[7].mxu0 }
 0x187   :  { %v382_v52 = vmul.f32 5.0, %v367_v51 }
 0x188   :  { %v393_v53 = vsel %vm182_vm2, %v383_v50, -1e+30 }
 0x189   :  { %408 = vmax.xlane.f32.xlu1 %v393_v53  ;;  %v392_v54 = vsel %vm182_vm2, %v382_v52, -1e+30 }
 0x18a   :  { %406 = vmax.xlane.f32.xlu0 %v392_v54 }
 0x20a   :  { %v397_v55 = vpop.xlane.xlu1 %396 }
 0x20b   :  { %v411_v56 = vsub.f32 %v387_v35, %v397_v55  ;;  %v395_v57 = vpop.xlane.xlu0 %394 }
 0x20c   :  { %v410_v58 = vsub.f32 %v386_v37, %v395_v57 }
 0x20d   :  { %v420_v59 = vmul.f32 1.442695, %v411_v56 }
 0x20e   :  { %v418_v60 = vmul.f32 1.442695, %v410_v58  ;;  %v401_v61 = vpop.xlane.xlu1 %400 }
 0x20f   :  { %1053 = vpow2.f32 %v420_v59  ;;  %v413_v62 = vsub.f32 %v389_v41, %v401_v61  ;;  %v399_v63 = vpop.xlane.xlu0 %398 }
 0x210   :  { %1055 = vpow2.f32 %v418_v60  ;;  %v412_v3 = vsub.f32 %v388_v43, %v399_v63 }
 0x211   :  { %v424_v4 = vmul.f32 1.442695, %v413_v62 }
 0x212   :  { %v422_v6 = vmul.f32 1.442695, %v412_v3  ;;  %v405_v7 = vpop.xlane.xlu1 %404 }
 0x213   :  { %1057 = vpow2.f32 %v424_v4  ;;  %v415_v10 = vsub.f32 %v391_v47, %v405_v7  ;;  %v403_v11 = vpop.xlane.xlu0 %402 }
 0x214   :  { %1059 = vpow2.f32 %v422_v6  ;;  %v414_v12 = vsub.f32 %v390_v49, %v403_v11 }
 0x215   :  { %v428_v13 = vmul.f32 1.442695, %v415_v10  ;;  %v748_v10 = vld [vmem:[%s1572_s4] sm:$0x1] }
 0x216   :  { %v426_v14 = vmul.f32 1.442695, %v414_v12  ;;  %v409_v15 = vpop.xlane.xlu1 %408 }
 0x217   :  { %1061 = vpow2.f32 %v428_v13  ;;  %v417_v16 = vsub.f32 %v393_v53, %v409_v15  ;;  %v407_v17 = vpop.xlane.xlu0 %406 }
 0x218   :  { %1063 = vpow2.f32 %v426_v14  ;;  %v416_v18 = vsub.f32 %v392_v54, %v407_v17 }
 0x219   :  { %v1054_v19 = vpop.eup %1053  ;;  %v432_v22 = vmul.f32 1.442695, %v417_v16 }
 0x21a   :  { %v1056_v23 = vpop.eup %1055  ;;  %v430_v24 = vmul.f32 1.442695, %v416_v18  ;;  %436 = vadd.xlane.f32.xlu1 %v1054_v19 }
 0x21b   :  { %1065 = vpow2.f32 %v432_v22  ;;  %434 = vadd.xlane.f32.xlu0 %v1056_v23 }
 0x21c   :  { %1067 = vpow2.f32 %v430_v24 }
 0x21d   :  { %v1058_v25 = vpop.eup %1057 }
 0x21e   :  { %v1060_v26 = vpop.eup %1059  ;;  %440 = vadd.xlane.f32.xlu1 %v1058_v25 }
 0x21f   :  { %438 = vadd.xlane.f32.xlu0 %v1060_v26 }
 0x221   :  { %v1062_v27 = vpop.eup %1061 }
 0x222   :  { %v1064_v28 = vpop.eup %1063  ;;  %444 = vadd.xlane.f32.xlu1 %v1062_v27 }
 0x223   :  { %442 = vadd.xlane.f32.xlu0 %v1064_v28 }
 0x225   :  { %v1314_v29 = vpop.eup %1065 }
 0x226   :  { %v1068_v30 = vpop.eup %1067  ;;  %448 = vadd.xlane.f32.xlu1 %v1314_v29 }
 0x227   :  { %446 = vadd.xlane.f32.xlu0 %v1068_v30 }
 0x2a7   :  { %v437_v32 = vpop.xlane.xlu1 %436 }
 0x2a8   :  { %1069 = vrcp.f32 %v437_v32  ;;  %v435_v33 = vpop.xlane.xlu0 %434 }
 0x2a9   :  { %1071 = vrcp.f32 %v435_v33 }
 0x2ab   :  { %v441_v34 = vpop.xlane.xlu1 %440 }
 0x2ac   :  { %1073 = vrcp.f32 %v441_v34  ;;  %v439_v35 = vpop.xlane.xlu0 %438  ;;  %v103_v34 = vsel %vm21_vm0, %v1148_v1, 0.0 }
 0x2ad   :  { %1075 = vrcp.f32 %v439_v35 }
 0x2af   :  { %v445_v36 = vpop.xlane.xlu1 %444 }
 0x2b0   :  { %1077 = vrcp.f32 %v445_v36  ;;  %v443_v37 = vpop.xlane.xlu0 %442 }
 0x2b1   :  { %1079 = vrcp.f32 %v443_v37  ;;  %v105_v37 = vsel %vm21_vm0, %v1162_v5, 0.0 }
 0x2b2   :  { %v1070_v38 = vpop.eup %1069 }
 0x2b3   :  { %v1072_v39 = vpop.eup %1071  ;;  %v449_v40 = vpop.xlane.xlu1 %448  ;;  %v453_v43 = vmul.f32 %v1070_v38, %v1054_v19 }
 0x2b4   :  { %1081 = vrcp.f32 %v449_v40  ;;  %v447_v41 = vpop.xlane.xlu0 %446  ;;  %v451_v42 = vmul.f32 %v1072_v39, %v1056_v23 }
 0x2b5   :  { %1083 = vrcp.f32 %v447_v41  ;;  %v111_v41 = vsel %vm21_vm0, %v1201_v20, 0.0 }
 0x2b6   :  { %v1074_v44 = vpop.eup %1073  ;;  %490 = vxpose.xlu0.b32.start [1/8] (short) %v451_v42, 128  ;;  %v749_v46 = vadd.f32 %v453_v43, %v451_v42  ;;  %v113_v42 = vsel %vm21_vm0, %v1206_v21, 0.0 }
 0x2b7   :  { %v1076_v45 = vpop.eup %1075  ;;  %v457_v50 = vmul.f32 %v1074_v44, %v1058_v25 }
 0x2b8   :  { %v455_v47 = vmul.f32 %v1076_v45, %v1060_v26 }
 0x2ba   :  { %v1078_v48 = vpop.eup %1077  ;;  %491 = vxpose.xlu0.b32.cont [2/8] (short) %v453_v43, 128  ;;  %v750_v49 = vadd.f32 %v749_v46, %v455_v47 }
 0x2bb   :  { %v1080_v51 = vpop.eup %1079  ;;  %v461_v56 = vmul.f32 %v1078_v48, %v1062_v27 }
 0x2bc   :  { %v751_v52 = vadd.f32 %v750_v49, %v457_v50  ;;  %v459_v53 = vmul.f32 %v1080_v51, %v1064_v28 }
 0x2be   :  { %v1082_v54 = vpop.eup %1081  ;;  %492 = vxpose.xlu0.b32.cont [3/8] (short) %v455_v47, 128  ;;  %v752_v55 = vadd.f32 %v751_v52, %v459_v53 }
 0x2bf   :  { %v1084_v57 = vpop.eup %1083  ;;  %v465_v61 = vmul.f32 %v1082_v54, %v1314_v29  ;;  %v100_v29 = vsel %vm21_vm0, %v1143_v0, 0.0  ;;  %v107_v0 = vsel %vm21_vm0, %v1171_v8, 0.0 }
 0x2c0   :  { %v753_v58 = vadd.f32 %v752_v55, %v461_v56  ;;  %v463_v59 = vmul.f32 %v1084_v57, %v1068_v30  ;;  %v101_v30 = vsel %vm21_vm0, %v1153_v2, 0.0  ;;  %v109_v2 = vsel %vm21_vm0, %v1176_v9, 0.0  ;;  %v74_v9 = vld [vmem:[#allocation2] sm:$0x1] }
 0x2c1   :  { %v102_v33 = vadd.f32 %v101_v30, %v100_v29 }
 0x2c2   :  { %493 = vxpose.xlu0.b32.cont [4/8] (short) %v457_v50, 128  ;;  %v754_v60 = vadd.f32 %v753_v58, %v463_v59 }
 0x2c3   :  { %v104_v36 = vadd.f32 %v103_v34, %v102_v33 }
 0x2c4   :  { %v755_v62 = vadd.f32 %v754_v60, %v465_v61 }
 0x2c5   :  { %v106_v38 = vadd.f32 %v105_v37, %v104_v36 }
 0x2c6   :  { %494 = vxpose.xlu0.b32.cont [5/8] (short) %v459_v53, 128  ;;  %v756_v63 = vrot.slane %v755_v62, 4 }
 0x2c7   :  { %v108_v39 = vadd.f32 %v107_v0, %v106_v38 }
 0x2c8   :  { %v757_v3 = vadd.f32 %v756_v63, %v755_v62 }
 0x2c9   :  { %v110_v40 = vadd.f32 %v109_v2, %v108_v39 }
 0x2ca   :  { %495 = vxpose.xlu0.b32.cont [6/8] (short) %v461_v56, 128  ;;  %v758_v4 = vrot.slane %v757_v3, 2 }
 0x2cb   :  { %v112_v1 = vadd.f32 %v111_v41, %v110_v40 }
 0x2cc   :  { %v759_v6 = vadd.f32 %v758_v4, %v757_v3 }
 0x2cd   :  { %v114_v43 = vadd.f32 %v113_v42, %v112_v1 }
 0x2ce   :  { %496 = vxpose.xlu0.b32.cont [7/8] (short) %v463_v59, 128  ;;  %v760_v7 = vrot.slane %v759_v6, 1 }
 0x2cf   :  { %v115_v44 = vrot.slane %v114_v43, 4 }
 0x2d0   :  { %v761_v11 = vadd.f32 %v760_v7, %v759_v6 }
 0x2d1   :  { %v116_v45 = vadd.f32 %v115_v44, %v114_v43 }
 0x2d2   :  { %497 = vxpose.xlu0.b32.end [8/8] (short) %v465_v61, 128  ;;  %v762_v12 = vadd.f32 %v761_v11, %v748_v10 }
 0x2d3   :  { %v117_v5 = vrot.slane %v116_v45, 2 }
 0x2d4   :  { %763 = vst [vmem:[%s1572_s4] sm:$0x1] %v762_v12  ;;  %s1114_s4 = smov [#allocation2]  }
 0x2d5   :  { %v118_v46 = vadd.f32 %v117_v5, %v116_v45  ;;  %s782_s18 = sshll.u32 %s1114_s4, 4  ;;  %s783_s18 = int_to_ptr.vmem [resolvable:$true] %s782_s18 }
 0x2d6   :  { %s1089_s19 = scalar_lea.vmem %s783_s18, 16  ;;  %s1093_s20 = scalar_lea.vmem %s783_s18, 32 }
 0x2d7   :  { %v119_v8 = vrot.slane %v118_v46, 1  ;;  %p1090_p0 = scmp.ne.s32.totalorder %s783_s18, %s1089_s19  ;;  %p1094_p1 = scmp.lt.s32.totalorder %s783_s18, %s783_s18 }
 0x2d8   :  { %p1095_p2 = scmp.lt.s32.totalorder %s1093_s20, %s1089_s19 }
 0x2d9   :  { %v120_v47 = vadd.f32 %v119_v8, %v118_v46 }
 0x2da   :  { %p1096_p3 = por %p1095_p2, %p1094_p1 }
 0x2db   :  { %v121_v48 = vadd.f32 %v120_v47, %v74_v9 }
 0x2dc   :  { %p1097_p4 = pnand %p1096_p3, %p1090_p0 }
 0x2dd   :  { %123 = vst.msk [vmem:[#allocation2] sm:$0x1] %vm19_vm4, %v121_v48 }
 0x2e4   :  { %v767_v20 = vld [vmem:[#allocation2] sm:$0x1] }
 0x2e5   :  { %v838_v49 = vmul.f32 -0.015625, %v767_v20 }
 0x2e7   :  { %v770_v50 = vmul.f32 1.442695, %v838_v49 }
 0x2e9   :  { %1085 = vpow2.f32 %v770_v50 }
 0x2f3   :  { %v1086_v21 = vpop.eup %1085 }
 0x2f4   :  { %v772_v51 = vadd.f32 1.0, %v1086_v21 }
 0x2f6   :  { %1087 = vrcp.f32 %v772_v51 }
 0x300   :  { %v1088_v52 = vpop.eup %1087 }
 0x301   :  { %775 = vst.msk [vmem:[#allocation2] sm:$0x1] %vm19_vm4, %v1088_v52 }
 0x336   :  { %v506_v13 = vpop.trf.xlu0 }
 0x337   :  { %947 = vmatprep.mubr.msk.f32.mxu1 %vm522_vm3, %v506_v13 }
 0x33a   :  { %v507_v14 = vpop.trf.xlu0 }
 0x33b   :  { %948 = vmatmul.mubr.msk.f32.vlgmr.msra.gmra.mrb[0].mxu1 %vm522_vm3, %v507_v14 }
 0x33e   :  { %v508_v15 = vpop.trf.xlu0 }
 0x33f   :  { %950 = vmatprep.mubr.msk.f32.mxu1 %vm522_vm3, %v508_v15 }
 0x342   :  { %v509_v16 = vpop.trf.xlu0 }
 0x343   :  { %951 = vmatmul.mubr.msk.f32.gmra.mrb[2].mxu1 %vm522_vm3, %v509_v16 }
 0x346   :  { %v510_v17 = vpop.trf.xlu0 }
 0x347   :  { %953 = vmatprep.mubr.msk.f32.mxu1 %vm522_vm3, %v510_v17 }
 0x34a   :  { %v511_v18 = vpop.trf.xlu0 }
 0x34b   :  { %954 = vmatmul.mubr.msk.f32.gmra.mrb[4].mxu1 %vm522_vm3, %v511_v18 }
 0x34e   :  { %v512_v19 = vpop.trf.xlu0 }
 0x34f   :  { %956 = vmatprep.mubr.msk.f32.mxu1 %vm522_vm3, %v512_v19 }
 0x352   :  { %v513_v22 = vpop.trf.xlu0 }
 0x353   :  { %957 = vmatmul.mubr.msk.f32.gmra.mrb[6].mxu1 %vm522_vm3, %v513_v22 }
 0x356   :  { %v514_v23 = vpop.trf.xlu0 }
 0x357   :  { %959 = vmatprep.mubr.msk.f32.mxu1 %vm522_vm3, %v514_v23 }
 0x35a   :  { %v515_v24 = vpop.trf.xlu0 }
 0x35b   :  { %960 = vmatmul.mubr.msk.f32.gmra.mrb[8].mxu1 %vm522_vm3, %v515_v24 }
 0x35e   :  { %v516_v25 = vpop.trf.xlu0 }
 0x35f   :  { %962 = vmatprep.mubr.msk.f32.mxu1 %vm522_vm3, %v516_v25 }
 0x362   :  { %v517_v26 = vpop.trf.xlu0 }
 0x363   :  { %963 = vmatmul.mubr.msk.f32.gmra.mrb[10].mxu1 %vm522_vm3, %v517_v26 }
 0x366   :  { %v518_v27 = vpop.trf.xlu0 }
 0x367   :  { %965 = vmatprep.mubr.msk.f32.mxu1 %vm522_vm3, %v518_v27 }
 0x36a   :  { %v519_v28 = vpop.trf.xlu0 }
 0x36b   :  { %966 = vmatmul.mubr.msk.f32.gmra.mrb[12].mxu1 %vm522_vm3, %v519_v28 }
 0x36e   :  { %v520_v32 = vpop.trf.xlu0 }
 0x36f   :  { %968 = vmatprep.mubr.msk.f32.mxu1 %vm522_vm3, %v520_v32 }
 0x372   :  { %v521_v35 = vpop.trf.xlu0 }
 0x373   :  { %969 = vmatmul.mubr.msk.f32.gmra.mrb[14].mxu1 %vm522_vm3, %v521_v35 }
 0x374   :  { %1100 = shalt.err (!%p1097_p4)
}
 0x375   :  { %s1101_s23 = scalar_lea.hbm %s1570_s2, 16 }
 0x376   :  { %p1102_p5 = scmp.ne.s32.totalorder %s1570_s2, %s1101_s23  ;;  %p1105_p6 = scmp.lt.u32.totalorder %s1101_s23, %s1570_s2 }
 0x378   :  { %p1107_p7 = pnand %p1105_p6, %p1102_p5 }
 0x37a   :  { %1110 = shalt.err (!%p1107_p7)
}
 0x37b   :  { %785 = dma.vmem_to_hbm [thread:$0]  %s783_s18, 16, %s1570_s2, [#allocation3]   ;;  %v475_v31 = vld [vmem:[%s1571_s3 + $0x8] sm:$0xff]  ;;  %v474_v53 = vld [vmem:[%s1571_s3] sm:$0xff]  ;;  %v477_v58 = vld [vmem:[%s1571_s3 + $0x18] sm:$0xff] }
 0x37c   :  { %v476_v59 = vld [vmem:[%s1571_s3 + $0x10] sm:$0xff]  ;;  %v479_v3 = vld [vmem:[%s1571_s3 + $0x28] sm:$0xff]  ;;  %v478_v4 = vld [vmem:[%s1571_s3 + $0x20] sm:$0xff] }
 0x37d   :  { %v481_v12 = vld [vmem:[%s1571_s3 + $0x38] sm:$0xff]  ;;  %v480_v13 = vld [vmem:[%s1571_s3 + $0x30] sm:$0xff]  ;;  %v483_v18 = vld [vmem:[%s1571_s3 + $0x48] sm:$0xff] }
 0x37e   :  { %v482_v19 = vld [vmem:[%s1571_s3 + $0x40] sm:$0xff]  ;;  %v485_v26 = vld [vmem:[%s1571_s3 + $0x58] sm:$0xff]  ;;  %v484_v27 = vld [vmem:[%s1571_s3 + $0x50] sm:$0xff] }
 0x37f   :  { %v487_v33 = vld [vmem:[%s1571_s3 + $0x68] sm:$0xff]  ;;  %v486_v34 = vld [vmem:[%s1571_s3 + $0x60] sm:$0xff]  ;;  %v489_v0 = vld [vmem:[%s1571_s3 + $0x78] sm:$0xff] }
 0x380   :  { %v488_v39 = vld [vmem:[%s1571_s3 + $0x70] sm:$0xff] }
 0x40e   :  { %v949_v54 = vpop.f32.mrb[0].mxu1 }
 0x40f   :  { %v717_v55 = vadd.f32 %v949_v54, %v475_v31  ;;  %v637_v56 = vpop.f32.mrb[1].mxu1 }
 0x410   :  { %v716_v57 = vadd.f32 %v637_v56, %v474_v53 }
 0x411   :  { %733 = vst.msk [vmem:[%s1571_s3 + $0x8] sm:$0xff] %vm21_vm0, %v717_v55 }
 0x412   :  { %732 = vst.msk [vmem:[%s1571_s3] sm:$0xff] %vm21_vm0, %v716_v57 }
 0x416   :  { %v952_v60 = vpop.f32.mrb[2].mxu1 }
 0x417   :  { %v719_v61 = vadd.f32 %v952_v60, %v477_v58  ;;  %v647_v62 = vpop.f32.mrb[3].mxu1 }
 0x418   :  { %v718_v63 = vadd.f32 %v647_v62, %v476_v59 }
 0x419   :  { %735 = vst.msk [vmem:[%s1571_s3 + $0x18] sm:$0xff] %vm21_vm0, %v719_v61 }
 0x41a   :  { %734 = vst.msk [vmem:[%s1571_s3 + $0x10] sm:$0xff] %vm21_vm0, %v718_v63 }
 0x41e   :  { %v955_v6 = vpop.f32.mrb[4].mxu1 }
 0x41f   :  { %v721_v7 = vadd.f32 %v955_v6, %v479_v3  ;;  %v657_v10 = vpop.f32.mrb[5].mxu1 }
 0x420   :  { %v720_v11 = vadd.f32 %v657_v10, %v478_v4 }
 0x421   :  { %737 = vst.msk [vmem:[%s1571_s3 + $0x28] sm:$0xff] %vm21_vm0, %v721_v7 }
 0x422   :  { %736 = vst.msk [vmem:[%s1571_s3 + $0x20] sm:$0xff] %vm21_vm0, %v720_v11 }
 0x426   :  { %v958_v14 = vpop.f32.mrb[6].mxu1 }
 0x427   :  { %v723_v15 = vadd.f32 %v958_v14, %v481_v12  ;;  %v667_v16 = vpop.f32.mrb[7].mxu1 }
 0x428   :  { %v722_v17 = vadd.f32 %v667_v16, %v480_v13 }
 0x429   :  { %739 = vst.msk [vmem:[%s1571_s3 + $0x38] sm:$0xff] %vm21_vm0, %v723_v15 }
 0x42a   :  { %738 = vst.msk [vmem:[%s1571_s3 + $0x30] sm:$0xff] %vm21_vm0, %v722_v17 }
 0x42e   :  { %v961_v22 = vpop.f32.mrb[8].mxu1 }
 0x42f   :  { %v725_v23 = vadd.f32 %v961_v22, %v483_v18  ;;  %v677_v24 = vpop.f32.mrb[9].mxu1 }
 0x430   :  { %v724_v25 = vadd.f32 %v677_v24, %v482_v19 }
 0x431   :  { %741 = vst.msk [vmem:[%s1571_s3 + $0x48] sm:$0xff] %vm21_vm0, %v725_v23 }
 0x432   :  { %740 = vst.msk [vmem:[%s1571_s3 + $0x40] sm:$0xff] %vm21_vm0, %v724_v25 }
 0x436   :  { %v964_v28 = vpop.f32.mrb[10].mxu1 }
 0x437   :  { %v727_v29 = vadd.f32 %v964_v28, %v485_v26  ;;  %v687_v30 = vpop.f32.mrb[11].mxu1 }
 0x438   :  { %v726_v32 = vadd.f32 %v687_v30, %v484_v27 }
 0x439   :  { %743 = vst.msk [vmem:[%s1571_s3 + $0x58] sm:$0xff] %vm21_vm0, %v727_v29 }
 0x43a   :  { %742 = vst.msk [vmem:[%s1571_s3 + $0x50] sm:$0xff] %vm21_vm0, %v726_v32 }
 0x43e   :  { %v967_v35 = vpop.f32.mrb[12].mxu1 }
 0x43f   :  { %v729_v36 = vadd.f32 %v967_v35, %v487_v33  ;;  %v697_v37 = vpop.f32.mrb[13].mxu1 }
 0x440   :  { %v728_v38 = vadd.f32 %v697_v37, %v486_v34 }
 0x441   :  { %745 = vst.msk [vmem:[%s1571_s3 + $0x68] sm:$0xff] %vm21_vm0, %v729_v36 }
 0x442   :  { %744 = vst.msk [vmem:[%s1571_s3 + $0x60] sm:$0xff] %vm21_vm0, %v728_v38 }
 0x446   :  { %v970_v2 = vpop.f32.mrb[14].mxu1 }
 0x447   :  { %v731_v40 = vadd.f32 %v970_v2, %v489_v0  ;;  %v707_v41 = vpop.f32.mrb[15].mxu1 }
 0x448   :  { %v730_v1 = vadd.f32 %v707_v41, %v488_v39 }
 0x449   :  { %747 = vst.msk [vmem:[%s1571_s3 + $0x78] sm:$0xff] %vm21_vm0, %v731_v40 }
 0x44a   :  { %746 = vst.msk [vmem:[%s1571_s3 + $0x70] sm:$0xff] %vm21_vm0, %v730_v1 }
 0x44b   :  { %1111 = dma.done.wait [#allocation3], 16  }
 0x44c   :  { %1112 = vsyncadd [#allocation3], 4294967280 }
 0x44d   :  { %797 = vsyncpa [#allocation3], 1 }

</bundles_post_ra>
